<compile_context>
chip_gen: v7x
topology: tpu7x:2x2x1
jax: 0.10.0
libtpu: 0.0.40
codegen_flags: <defaults>
</compile_context>

<pallas_src>
import functools
import math

import jax
import jax.numpy as jnp
import numpy as np
from jax import lax
from jax.experimental import pallas as pl
from jax.experimental.pallas import tpu as pltpu


def gaussian_rot(x, y, sigma_u, sigma_v, theta=0.0):
    return math.exp(
        -0.5
        * (
            (x * math.cos(theta) + y * math.sin(theta)) ** 2 / (sigma_u * sigma_u)
            + (-x * math.sin(theta) + y * math.cos(theta)) ** 2 / (sigma_v * sigma_v)
        )
    )


def make_gaussian_kernel(kernel_size, sigma_x, sigma_y, theta=0.0):
    """Deterministic construction mirroring GaussianFilter.__init__ (normalized (K,K) f64 numpy)."""
    k = np.zeros((kernel_size, kernel_size), dtype=np.float64)
    for i in range(kernel_size):
        for j in range(kernel_size):
            k[i, j] = gaussian_rot(
                i - kernel_size // 2, j - kernel_size // 2, sigma_x, sigma_y, theta
            )
    k /= k.sum()
    return k


def _gaussian_conv_kernel(x_ref, o_ref, *, taps, K, Ho, Wo):
    # x_ref: (chunk, H, W) VMEM tile covering `chunk` flattened (n, c) images.
    # o_ref: (chunk, Ho, Wo) VMEM output tile.
    # taps:  K x K tuple-of-tuples of Python floats (compile-time constants).
    x = x_ref[...].astype(jnp.float32)
    chunk, H, W = x.shape
    acc = jnp.zeros((chunk, Ho, Wo), dtype=jnp.float32)
    # F.conv2d is cross-correlation: out[c,h,w] = sum_{i,j} w[i,j] * x[c, h+i, w+j]
    for j in range(K):
        # One lane-axis (W) shift per j; everything inside the i-loop is sublane-only.
        x_j = lax.slice(x, (0, 0, j), (chunk, H, j + Wo))  # (chunk, H, Wo)
        for i in range(K):
            acc = acc + taps[i][j] * lax.slice(x_j, (0, i, 0), (chunk, i + Ho, Wo))
    o_ref[...] = acc.astype(o_ref.dtype)


def _pick_chunk(NC, H, W, itemsize, vmem_budget_bytes=8 << 20):
    """Largest divisor of NC whose input tile fits the budget, preferring >= 2 grid steps
    so work shards across both TensorCores on v7x (single fused step on 1-TC chips is also
    handled: if no multi-step divisor fits, fall back to the largest fitting divisor)."""
    divisors = [d for d in range(1, NC + 1) if NC % d == 0]
    fitting = [d for d in divisors if d * H * W * itemsize <= vmem_budget_bytes] or [1]
    multi_step = [d for d in fitting if NC // d >= 2]
    return max(multi_step) if multi_step else max(fitting)


def gaussian_filter(x, weight_np):
    """x: (N, C, H, W) jax array; weight_np: (K, K) numpy Gaussian kernel (compile-time).
    Returns (N, C, H-K+1, W-K+1), same dtype as x."""
    N, C, H, W = x.shape
    K = int(weight_np.shape[0])
    Ho, Wo = H - K + 1, W - K + 1
    NC = N * C

    taps = tuple(tuple(float(v) for v in row) for row in np.asarray(weight_np, np.float64))

    x2 = x.reshape(NC, H, W)
    chunk = _pick_chunk(NC, H, W, x.dtype.itemsize)
    grid = (NC // chunk,)

    kernel = functools.partial(_gaussian_conv_kernel, taps=taps, K=K, Ho=Ho, Wo=Wo)
    out = pl.pallas_call(
        kernel,
        out_shape=jax.ShapeDtypeStruct((NC, Ho, Wo), x.dtype),
        grid=grid,
        in_specs=[pl.BlockSpec((chunk, H, W), lambda g: (g, 0, 0))],
        out_specs=pl.BlockSpec((chunk, Ho, Wo), lambda g: (g, 0, 0)),
        compiler_params=pltpu.CompilerParams(dimension_semantics=("parallel",)),
    )(x2)
    return out.reshape(N, C, Ho, Wo)


def _reference(x, weight_np):
    """Pure-JAX reference: grouped (depthwise) valid conv, same semantics as F.conv2d(groups=C)."""
    C = x.shape[1]
    w2 = jnp.asarray(weight_np, dtype=jnp.float32)
    w = jnp.broadcast_to(w2[None, None, :, :], (C, 1) + w2.shape)
    return lax.conv_general_dilated(
        x,
        w,
        window_strides=(1, 1),
        padding="VALID",
        dimension_numbers=("NCHW", "OIHW", "NCHW"),
        feature_group_count=C,
    )


if __name__ == "__main__":
    # Small, deterministic example consistent with the module: channels=4, 16x16 spatial.
    N, C, H, W = 2, 4, 16, 16
    kernel_size, sigma_x, sigma_y, theta = 5, 1.5, 1.0, 0.3

    key = jax.random.PRNGKey(0)
    x = jax.random.normal(key, (N, C, H, W), dtype=jnp.float32)
    weight_np = make_gaussian_kernel(kernel_size, sigma_x, sigma_y, theta)

    out = gaussian_filter(x, weight_np)
    out = jax.block_until_ready(out)

    ref = jax.block_until_ready(_reference(x, weight_np))
    assert out.shape == (N, C, H - kernel_size + 1, W - kernel_size + 1)
    np_out = np.asarray(out)
    np_ref = np.asarray(ref)
    assert np.allclose(np_out, np_ref, atol=1e-5, rtol=1e-5), "mismatch vs reference conv"

    print("KERNEL_OK")
</pallas_src>

<mosaic_0001>
module attributes {stable_mosaic.version = 11 : i64} {
  func.func @_gaussian_conv_kernel(%arg0: i32, %arg1: memref<4x16x16xf32, #tpu.memory_space<vmem>>, %arg2: memref<4x12x12xf32, #tpu.memory_space<vmem>>) attributes {dimension_semantics = [#tpu.dimension_semantics<parallel>], iteration_bounds = array<i64: 2>, scalar_prefetch = 0 : i64, scratch_operands = 0 : i64, tpu.core_type = #tpu.core_type<tc>, window_params = [{transform_indices = @transform_0, window_bounds = array<i64: 4, 16, 16>}, {transform_indices = @transform_1, window_bounds = array<i64: 4, 12, 12>}]} {
    %c0 = arith.constant 0 : index
    %c0_0 = arith.constant 0 : index
    %c0_1 = arith.constant 0 : index
    %0 = vector.load %arg1[%c0, %c0_0, %c0_1] : memref<4x16x16xf32, #tpu.memory_space<vmem>>, vector<4x16x16xf32>
    %cst = arith.constant 0.000000e+00 : f32
    %1 = vector.broadcast %cst : f32 to vector<4x12x12xf32>
    %2 = vector.extract_strided_slice %0 {offsets = [0, 0, 0], sizes = [4, 16, 12], strides = [1, 1, 1]} : vector<4x16x16xf32> to vector<4x16x12xf32>
    %3 = vector.extract_strided_slice %2 {offsets = [0, 0, 0], sizes = [4, 12, 12], strides = [1, 1, 1]} : vector<4x16x12xf32> to vector<4x12x12xf32>
    %cst_2 = arith.constant 0.0121898428 : f32
    %4 = vector.broadcast %cst_2 : f32 to vector<4x12x12xf32>
    %5 = arith.mulf %4, %3 : vector<4x12x12xf32>
    %6 = arith.addf %1, %5 : vector<4x12x12xf32>
    %7 = vector.extract_strided_slice %2 {offsets = [0, 1, 0], sizes = [4, 12, 12], strides = [1, 1, 1]} : vector<4x16x12xf32> to vector<4x12x12xf32>
    %cst_3 = arith.constant 0.0186595153 : f32
    %8 = vector.broadcast %cst_3 : f32 to vector<4x12x12xf32>
    %9 = arith.mulf %8, %7 : vector<4x12x12xf32>
    %10 = arith.addf %6, %9 : vector<4x12x12xf32>
    %11 = vector.extract_strided_slice %2 {offsets = [0, 2, 0], sizes = [4, 12, 12], strides = [1, 1, 1]} : vector<4x16x12xf32> to vector<4x12x12xf32>
    %cst_4 = arith.constant 0.0174466409 : f32
    %12 = vector.broadcast %cst_4 : f32 to vector<4x12x12xf32>
    %13 = arith.mulf %12, %11 : vector<4x12x12xf32>
    %14 = arith.addf %10, %13 : vector<4x12x12xf32>
    %15 = vector.extract_strided_slice %2 {offsets = [0, 3, 0], sizes = [4, 12, 12], strides = [1, 1, 1]} : vector<4x16x12xf32> to vector<4x12x12xf32>
    %cst_5 = arith.constant 0.00996397156 : f32
    %16 = vector.broadcast %cst_5 : f32 to vector<4x12x12xf32>
    %17 = arith.mulf %16, %15 : vector<4x12x12xf32>
    %18 = arith.addf %14, %17 : vector<4x12x12xf32>
    %19 = vector.extract_strided_slice %2 {offsets = [0, 4, 0], sizes = [4, 12, 12], strides = [1, 1, 1]} : vector<4x16x12xf32> to vector<4x12x12xf32>
    %cst_6 = arith.constant 0.00347586023 : f32
    %20 = vector.broadcast %cst_6 : f32 to vector<4x12x12xf32>
    %21 = arith.mulf %20, %19 : vector<4x12x12xf32>
    %22 = arith.addf %18, %21 : vector<4x12x12xf32>
    %23 = vector.extract_strided_slice %0 {offsets = [0, 0, 1], sizes = [4, 16, 12], strides = [1, 1, 1]} : vector<4x16x16xf32> to vector<4x16x12xf32>
    %24 = vector.extract_strided_slice %23 {offsets = [0, 0, 0], sizes = [4, 12, 12], strides = [1, 1, 1]} : vector<4x16x12xf32> to vector<4x12x12xf32>
    %cst_7 = arith.constant 0.0371192582 : f32
    %25 = vector.broadcast %cst_7 : f32 to vector<4x12x12xf32>
    %26 = arith.mulf %25, %24 : vector<4x12x12xf32>
    %27 = arith.addf %22, %26 : vector<4x12x12xf32>
    %28 = vector.extract_strided_slice %23 {offsets = [0, 1, 0], sizes = [4, 12, 12], strides = [1, 1, 1]} : vector<4x16x12xf32> to vector<4x12x12xf32>
    %cst_8 = arith.constant 0.0664689094 : f32
    %29 = vector.broadcast %cst_8 : f32 to vector<4x12x12xf32>
    %30 = arith.mulf %29, %28 : vector<4x12x12xf32>
    %31 = arith.addf %27, %30 : vector<4x12x12xf32>
    %32 = vector.extract_strided_slice %23 {offsets = [0, 2, 0], sizes = [4, 12, 12], strides = [1, 1, 1]} : vector<4x16x12xf32> to vector<4x12x12xf32>
    %cst_9 = arith.constant 7.270210e-02 : f32
    %33 = vector.broadcast %cst_9 : f32 to vector<4x12x12xf32>
    %34 = arith.mulf %33, %32 : vector<4x12x12xf32>
    %35 = arith.addf %31, %34 : vector<4x12x12xf32>
    %36 = vector.extract_strided_slice %23 {offsets = [0, 3, 0], sizes = [4, 12, 12], strides = [1, 1, 1]} : vector<4x16x12xf32> to vector<4x12x12xf32>
    %cst_10 = arith.constant 0.0485718437 : f32
    %37 = vector.broadcast %cst_10 : f32 to vector<4x12x12xf32>
    %38 = arith.mulf %37, %36 : vector<4x12x12xf32>
    %39 = arith.addf %35, %38 : vector<4x12x12xf32>
    %40 = vector.extract_strided_slice %23 {offsets = [0, 4, 0], sizes = [4, 12, 12], strides = [1, 1, 1]} : vector<4x16x12xf32> to vector<4x12x12xf32>
    %cst_11 = arith.constant 0.0198212657 : f32
    %41 = vector.broadcast %cst_11 : f32 to vector<4x12x12xf32>
    %42 = arith.mulf %41, %40 : vector<4x12x12xf32>
    %43 = arith.addf %39, %42 : vector<4x12x12xf32>
    %44 = vector.extract_strided_slice %0 {offsets = [0, 0, 2], sizes = [4, 16, 12], strides = [1, 1, 1]} : vector<4x16x16xf32> to vector<4x16x12xf32>
    %45 = vector.extract_strided_slice %44 {offsets = [0, 0, 0], sizes = [4, 12, 12], strides = [1, 1, 1]} : vector<4x16x12xf32> to vector<4x12x12xf32>
    %cst_12 = arith.constant 0.0436492786 : f32
    %46 = vector.broadcast %cst_12 : f32 to vector<4x12x12xf32>
    %47 = arith.mulf %46, %45 : vector<4x12x12xf32>
    %48 = arith.addf %43, %47 : vector<4x12x12xf32>
    %49 = vector.extract_strided_slice %44 {offsets = [0, 1, 0], sizes = [4, 12, 12], strides = [1, 1, 1]} : vector<4x16x12xf32> to vector<4x12x12xf32>
    %cst_13 = arith.constant 0.0914351716 : f32
    %50 = vector.broadcast %cst_13 : f32 to vector<4x12x12xf32>
    %51 = arith.mulf %50, %49 : vector<4x12x12xf32>
    %52 = arith.addf %48, %51 : vector<4x12x12xf32>
    %53 = vector.extract_strided_slice %44 {offsets = [0, 2, 0], sizes = [4, 12, 12], strides = [1, 1, 1]} : vector<4x16x12xf32> to vector<4x12x12xf32>
    %cst_14 = arith.constant 0.116992682 : f32
    %54 = vector.broadcast %cst_14 : f32 to vector<4x12x12xf32>
    %55 = arith.mulf %54, %53 : vector<4x12x12xf32>
    %56 = arith.addf %52, %55 : vector<4x12x12xf32>
    %57 = vector.extract_strided_slice %44 {offsets = [0, 3, 0], sizes = [4, 12, 12], strides = [1, 1, 1]} : vector<4x16x12xf32> to vector<4x12x12xf32>
    %cst_15 = arith.constant 0.0914351716 : f32
    %58 = vector.broadcast %cst_15 : f32 to vector<4x12x12xf32>
    %59 = arith.mulf %58, %57 : vector<4x12x12xf32>
    %60 = arith.addf %56, %59 : vector<4x12x12xf32>
    %61 = vector.extract_strided_slice %44 {offsets = [0, 4, 0], sizes = [4, 12, 12], strides = [1, 1, 1]} : vector<4x16x12xf32> to vector<4x12x12xf32>
    %cst_16 = arith.constant 0.0436492786 : f32
    %62 = vector.broadcast %cst_16 : f32 to vector<4x12x12xf32>
    %63 = arith.mulf %62, %61 : vector<4x12x12xf32>
    %64 = arith.addf %60, %63 : vector<4x12x12xf32>
    %65 = vector.extract_strided_slice %0 {offsets = [0, 0, 3], sizes = [4, 16, 12], strides = [1, 1, 1]} : vector<4x16x16xf32> to vector<4x16x12xf32>
    %66 = vector.extract_strided_slice %65 {offsets = [0, 0, 0], sizes = [4, 12, 12], strides = [1, 1, 1]} : vector<4x16x12xf32> to vector<4x12x12xf32>
    %cst_17 = arith.constant 0.0198212657 : f32
    %67 = vector.broadcast %cst_17 : f32 to vector<4x12x12xf32>
    %68 = arith.mulf %67, %66 : vector<4x12x12xf32>
    %69 = arith.addf %64, %68 : vector<4x12x12xf32>
    %70 = vector.extract_strided_slice %65 {offsets = [0, 1, 0], sizes = [4, 12, 12], strides = [1, 1, 1]} : vector<4x16x12xf32> to vector<4x12x12xf32>
    %cst_18 = arith.constant 0.0485718437 : f32
    %71 = vector.broadcast %cst_18 : f32 to vector<4x12x12xf32>
    %72 = arith.mulf %71, %70 : vector<4x12x12xf32>
    %73 = arith.addf %69, %72 : vector<4x12x12xf32>
    %74 = vector.extract_strided_slice %65 {offsets = [0, 2, 0], sizes = [4, 12, 12], strides = [1, 1, 1]} : vector<4x16x12xf32> to vector<4x12x12xf32>
    %cst_19 = arith.constant 7.270210e-02 : f32
    %75 = vector.broadcast %cst_19 : f32 to vector<4x12x12xf32>
    %76 = arith.mulf %75, %74 : vector<4x12x12xf32>
    %77 = arith.addf %73, %76 : vector<4x12x12xf32>
    %78 = vector.extract_strided_slice %65 {offsets = [0, 3, 0], sizes = [4, 12, 12], strides = [1, 1, 1]} : vector<4x16x12xf32> to vector<4x12x12xf32>
    %cst_20 = arith.constant 0.0664689094 : f32
    %79 = vector.broadcast %cst_20 : f32 to vector<4x12x12xf32>
    %80 = arith.mulf %79, %78 : vector<4x12x12xf32>
    %81 = arith.addf %77, %80 : vector<4x12x12xf32>
    %82 = vector.extract_strided_slice %65 {offsets = [0, 4, 0], sizes = [4, 12, 12], strides = [1, 1, 1]} : vector<4x16x12xf32> to vector<4x12x12xf32>
    %cst_21 = arith.constant 0.0371192582 : f32
    %83 = vector.broadcast %cst_21 : f32 to vector<4x12x12xf32>
    %84 = arith.mulf %83, %82 : vector<4x12x12xf32>
    %85 = arith.addf %81, %84 : vector<4x12x12xf32>
    %86 = vector.extract_strided_slice %0 {offsets = [0, 0, 4], sizes = [4, 16, 12], strides = [1, 1, 1]} : vector<4x16x16xf32> to vector<4x16x12xf32>
    %87 = vector.extract_strided_slice %86 {offsets = [0, 0, 0], sizes = [4, 12, 12], strides = [1, 1, 1]} : vector<4x16x12xf32> to vector<4x12x12xf32>
    %cst_22 = arith.constant 0.00347586023 : f32
    %88 = vector.broadcast %cst_22 : f32 to vector<4x12x12xf32>
    %89 = arith.mulf %88, %87 : vector<4x12x12xf32>
    %90 = arith.addf %85, %89 : vector<4x12x12xf32>
    %91 = vector.extract_strided_slice %86 {offsets = [0, 1, 0], sizes = [4, 12, 12], strides = [1, 1, 1]} : vector<4x16x12xf32> to vector<4x12x12xf32>
    %cst_23 = arith.constant 0.00996397156 : f32
    %92 = vector.broadcast %cst_23 : f32 to vector<4x12x12xf32>
    %93 = arith.mulf %92, %91 : vector<4x12x12xf32>
    %94 = arith.addf %90, %93 : vector<4x12x12xf32>
    %95 = vector.extract_strided_slice %86 {offsets = [0, 2, 0], sizes = [4, 12, 12], strides = [1, 1, 1]} : vector<4x16x12xf32> to vector<4x12x12xf32>
    %cst_24 = arith.constant 0.0174466409 : f32
    %96 = vector.broadcast %cst_24 : f32 to vector<4x12x12xf32>
    %97 = arith.mulf %96, %95 : vector<4x12x12xf32>
    %98 = arith.addf %94, %97 : vector<4x12x12xf32>
    %99 = vector.extract_strided_slice %86 {offsets = [0, 3, 0], sizes = [4, 12, 12], strides = [1, 1, 1]} : vector<4x16x12xf32> to vector<4x12x12xf32>
    %cst_25 = arith.constant 0.0186595153 : f32
    %100 = vector.broadcast %cst_25 : f32 to vector<4x12x12xf32>
    %101 = arith.mulf %100, %99 : vector<4x12x12xf32>
    %102 = arith.addf %98, %101 : vector<4x12x12xf32>
    %103 = vector.extract_strided_slice %86 {offsets = [0, 4, 0], sizes = [4, 12, 12], strides = [1, 1, 1]} : vector<4x16x12xf32> to vector<4x12x12xf32>
    %cst_26 = arith.constant 0.0121898428 : f32
    %104 = vector.broadcast %cst_26 : f32 to vector<4x12x12xf32>
    %105 = arith.mulf %104, %103 : vector<4x12x12xf32>
    %106 = arith.addf %102, %105 : vector<4x12x12xf32>
    %c0_27 = arith.constant 0 : index
    %c0_28 = arith.constant 0 : index
    %c0_29 = arith.constant 0 : index
    %107 = vector.load %arg2[%c0_27, %c0_28, %c0_29] : memref<4x12x12xf32, #tpu.memory_space<vmem>>, vector<4x12x12xf32>
    tpu.vector_store %arg2[%c0_27, %c0_28, %c0_29], %106 {strides = array<i32>} : memref<4x12x12xf32, #tpu.memory_space<vmem>>, vector<4x12x12xf32>,
    return
  }
  func.func @transform_0(%arg0: i32) -> (i32, i32, i32) {
    %c0_i32 = arith.constant 0 : i32
    %c0_i32_0 = arith.constant 0 : i32
    %c0_i32_1 = arith.constant 0 : i32
    return %arg0, %c0_i32, %c0_i32_0 : i32, i32, i32
  }
  func.func @transform_1(%arg0: i32) -> (i32, i32, i32) {
    %c0_i32 = arith.constant 0 : i32
    %c0_i32_0 = arith.constant 0 : i32
    %c0_i32_1 = arith.constant 0 : i32
    return %arg0, %c0_i32, %c0_i32_0 : i32, i32, i32
  }
}

</mosaic_0001>

<bundles_post_ra>
// kernel: tpu_custom_call.1
= control target key start
LH: loop header
LB: loop body
LE: loop exit
PB: predicated region body
PF: predicated region fallthrough
CT: control target
= control target key end

     0   :  { %6 = vsyncpa [#allocation3], 0  ;;  %s2782_s0 = inlined_call_operand.hbm [shape: f32[8,16,16], index: 0, kind: input, shape index: {}]   ;;  %s2783_s1 = inlined_call_operand.vmem [shape: f32[8,12,12], index: 1, kind: output, shape index: {}]  }
   0x1   :  { %8 = vsyncpa [#allocation3 + $0x1], 0  ;;  %s1515_s6 = smov 0   ;;  %s1517_s7 = smov 0  }
   0x2   :  { %s1519_s8 = smov 0   ;;  %s1521_s9 = smov 0  }
   0x3 LB: > { %s1369_s10 = sadd.s32 4294967295, %s1496_s9   ;;  %s1535_s11 = sadd.s32 1, %s1496_s9   ;;  %s1496_s9 = sphi %s1521_s9, %s3109_s9   ;;  %s1492_s8 = sphi %s1519_s8, %s3108_s8   ;;  %s1488_s7 = sphi %s1517_s7, %s3107_s7   ;;  %s1484_s6 = sphi %s1515_s6, %s3106_s6  }
   0x4   : > { %s18_s12 = ssub.s32 %s1496_s9, %s1535_s11  ;;  %s21_s13 = sadd.s32 1, %s1492_s8 }
   0x5   : > { %p19_p0 = scmp.eq.s32.totalorder %s18_s12, 0  ;;  %p28_p1 = scmp.ne.s32.totalorder %s1492_s8, %s1488_s7 }
   0x6   : > { %p29_p2 = scmp.eq.s32.totalorder %s1496_s9, 0  ;;  %p34_p3 = scmp.ne.s32.totalorder %s1488_s7, %s1484_s6 }
   0x7   : > { %s1545_s14 = scalar_select %p19_p0, %s1492_s8, %s21_s13  }
   0x8   : > { %p30_p4 = por %p29_p2, %p28_p1  ;;  %p35_p5 = scmp.eq.s32.totalorder %s1369_s10, 0 }
   0x9   : > { %p1393_p6 = scmp.lt.s32.totalorder %s1496_s9, 2  ;;  %s84_s16 = sand.u32 1, %s1492_s8  }
   0xa   : > { %p1550_p7 = por %p35_p5, %p34_p3  ;;  %s1373_s17 = sshll.u32 %s84_s16, 6 }
   0xb   : > { %s1385_s18 = sshll.u32 %s1496_s9, 10  ;;  %s88_s22 = scalar_lea.vmem [#allocation2], %s1373_s17 }
   0xc   : > { %s1559_s21 = scalar_lea.hbm %s2782_s0, %s1385_s18  ;;  %s96_s23 = sshll.u32 %s88_s22, 4  ;;  %s1561_s23 = int_to_ptr.vmem [resolvable:$true] %s96_s23 }
   0xd   : > { %p1563_p8 = pnand %p1393_p6, %p30_p4  ;;  %s1568_s25 = scalar_lea.sflag [#allocation3], %s84_s16 }
   0xe   : > { %s1432_s26 = scalar_lea.hbm %s1559_s21, 1024  ;;  %s1437_s29 = scalar_lea.hbm %s2782_s0, 2048 }
   0xf   : > { %p1433_p10 = scmp.ne.s32.totalorder %s1559_s21, %s1432_s26  ;;  %p1434_p11 = pneg %p1563_p8 }
  0x10   : > { %p1438_p0 = scmp.lt.u32.totalorder %s1559_s21, %s2782_s0  ;;  %p1439_p1 = scmp.lt.u32.totalorder %s1437_s29, %s1432_s26 }
  0x11   : > { %p1435_p12 = pnand %p1434_p11, %p1433_p10  ;;  %p1441_p3 = scmp.lt.u32.totalorder %s1432_s26, %s1559_s21 }
  0x12   : > { %p1440_p2 = por %p1439_p1, %p1438_p0 }
  0x13   : > { %p1436_p13 = pneg %p1435_p12 }
  0x14   : > { %p1442_p4 = por %p1441_p3, %p1440_p2 }
  0x16   : > { %p1443_p5 = pnand %p1442_p4, %p1436_p13 }
  0x18   : > { %1446 = shalt.err (!%p1443_p5)
}
  0x19   : > { %s1447_s3 = scalar_lea.vmem %s1561_s23, 1024  ;;  %s1498_s4 = smov [#allocation2]  }
  0x1a   : > { %p1448_p6 = scmp.ne.s32.totalorder %s1561_s23, %s1447_s3  ;;  %s1452_s5 = sshll.u32 %s1498_s4, 4  ;;  %s1453_s5 = int_to_ptr.vmem [resolvable:$false] %s1452_s5 }
  0x1b   : > { %s1454_s6 = scalar_lea.vmem %s1453_s5, 2048  ;;  %p1455_p9 = scmp.lt.s32.totalorder %s1561_s23, %s1453_s5 }
  0x1c   : > { %p1450_p10 = pnand %p1448_p6, %p1434_p11  ;;  %p1456_p0 = scmp.lt.s32.totalorder %s1454_s6, %s1447_s3 }
  0x1e   : > { %p1451_p12 = pneg %p1450_p10  ;;  %p1457_p1 = por %p1456_p0, %p1455_p9 }
  0x20   : > { %p1458_p2 = pnand %p1457_p1, %p1451_p12 }
  0x22   : > { %1461 = shalt.err (!%p1458_p2)
}
  0x23   : > { %s1499_s12 = smov 128   ;;  %s1500_s13 = smov 8  }
  0x24   : > { %1392 = dma.hbm_to_vmem [thread:$0]  (!%p1563_p8), %s1559_s21, 1024, %s1561_s23, %s1568_s25, %s1499_s12, %s1499_s12, %s1500_s13  }
  0x25   : > { %p104_p11 = scmp.lt.s32.totalorder %s1496_s9, 3  ;;  %p2871_p13 = scmp.ge.s32.totalorder %s1496_s9, 1 }
  0x27   : > { %p105_p3 = pnand %p2871_p13, %p104_p11 }
  0x29   : > { %108 = sbr.rel (%p105_p3) target bundleno = 490 (0x1ea), region = 24 }
  0x30   : > { %s110_s16 = sand.u32 1, %s1488_s7  }
  0x31   : > { %s1378_s17 = sshll.u32 %s110_s16, 6  ;;  %s111_s18 = scalar_lea.sflag [#allocation3], %s110_s16 }
  0x32   : > { %s114_s19 = scalar_lea.vmem [#allocation2], %s1378_s17 }
  0x33   : > { %1479 = dma.done.wait (%p1550_p7), %s111_s18, 1024  }
  0x34   : > { %1481 = vsyncadd (%p1550_p7), %s111_s18, 4294966272  ;;  %v1604_v0 = vld [vmem:[%s114_s19 + $0x10] sm:$0xff]  ;;  %v1606_v1 = vld [vmem:[%s114_s19] sm:$0xff]  ;;  %s1501_s20 = smov 127   ;;  %vm182_vm0 = vcmask 1046528   ;;  %vm227_vm1 = vcmask 1045504  }
  0x35   : > { %2872 = vst [vmem:[#allocation5_spill] sm:$0xff] %v1604_v0  ;;  %2873 = vst [vmem:[#allocation6_spill] sm:$0xff] %v1606_v1  ;;  %v1608_v2 = vld [vmem:[%s114_s19 + $0x18] sm:$0xff]  ;;  %v1611_v3 = vmul.f32 0.03711926, %v1604_v0  ;;  %v1616_v5 = vld [vmem:[%s114_s19 + $0x8] sm:$0xff] }
  0x36   : > { %2874 = vst [vmem:[#allocation7_spill] sm:$0xff] %v1608_v2  ;;  %v1614_v4 = vmul.f32 0.03711926, %v1606_v1  ;;  %2875 = vst [vmem:[#allocation8_spill] sm:$0xff] %v1616_v5  ;;  %v1623_v6 = vmul.f32 0.03711926, %v1608_v2 }
  0x37   : > { %366 = vrot.lane.b32.xlu1 %v1611_v3, %s1501_s20  ;;  %v1626_v7 = vmul.f32 0.03711926, %v1616_v5  ;;  %v1628_v8 = vld [vmem:[%s114_s19 + $0x28] sm:$0xff]  ;;  %v1630_v9 = vld [vmem:[%s114_s19 + $0x20] sm:$0xff]  ;;  %v1642_v12 = vld [vmem:[%s114_s19 + $0x38] sm:$0xff]  ;;  %vm272_vm2 = vcmask 1044480  }
  0x38   : > { %362 = vrot.lane.b32.xlu0 %v1614_v4, %s1501_s20  ;;  %2876 = vst [vmem:[#allocation9_spill] sm:$0xff] %v1628_v8  ;;  %2877 = vst [vmem:[#allocation10_spill] sm:$0xff] %v1630_v9  ;;  %v1637_v10 = vmul.f32 0.03711926, %v1628_v8  ;;  %v1640_v11 = vmul.f32 0.03711926, %v1630_v9 }
  0x39   : > { %v1644_v13 = vld [vmem:[%s114_s19 + $0x30] sm:$0xff]  ;;  %v1647_v14 = vmul.f32 0.06646891, %v1616_v5  ;;  %v1650_v15 = vmul.f32 0.06646891, %v1606_v1  ;;  %vm317_vm3 = vcmask 1043456  }
  0x3a   : > { %2878 = vst [vmem:[#allocation11_spill] sm:$0xff] %v1644_v13  ;;  %v1657_v16 = vmul.f32 0.03711926, %v1642_v12  ;;  %v1660_v17 = vmul.f32 0.03711926, %v1644_v13  ;;  %s1502_s15 = smov 126  }
  0x3b   : > { %368 = vrot.lane.b32.xlu1 %v1623_v6, %s1501_s20  ;;  %2879 = vst [vmem:[#allocation12_spill] sm:$0xff] %v1647_v14  ;;  %2880 = vst [vmem:[#allocation13_spill] sm:$0xff] %v1650_v15  ;;  %v411_v18 = vrot.slane %v1647_v14, 1  ;;  %v410_v19 = vrot.slane %v1650_v15, 1  ;;  %v1665_v20 = vmul.f32 0.06646891, %v1608_v2 }
  0x3c   : > { %364 = vrot.lane.b32.xlu0 %v1626_v7, %s1501_s20  ;;  %v1668_v21 = vmul.f32 0.06646891, %v1604_v0  ;;  %v1675_v22 = vmul.f32 0.06646891, %v1628_v8  ;;  %v1681_v26 = vmul.f32 0.06646891, %v1630_v9 }
  0x3d   : > { %2881 = vst [vmem:[#allocation14_spill] sm:$0xff] %v1665_v20  ;;  %v412_v23 = vsel %vm182_vm0, %v410_v19, %v411_v18  ;;  %v414_v24 = vrot.slane %v1665_v20, 1  ;;  %v1686_v27 = vmul.f32 0.06646891, %v1642_v12  ;;  %v1692_v31 = vmul.f32 0.06646891, %v1644_v13 }
  0x3e   : > { %2882 = vst [vmem:[#allocation15_spill] sm:$0xff] %v1668_v21  ;;  %2883 = vst [vmem:[#allocation16_spill] sm:$0xff] %v1675_v22  ;;  %v413_v25 = vrot.slane %v1668_v21, 1  ;;  %v417_v29 = vrot.slane %v1675_v22, 1  ;;  %v416_v30 = vrot.slane %v1681_v26, 1  ;;  %s1503_s21 = smov 125  }
  0x3f   : > { %372 = vrot.lane.b32.xlu1 %v1637_v10, %s1501_s20  ;;  %2884 = vst [vmem:[#allocation17_spill] sm:$0xff] %v1681_v26  ;;  %2885 = vst [vmem:[#allocation18_spill] sm:$0xff] %v1686_v27  ;;  %v455_v32 = vmul.f32 0.0727021, %v1616_v5  ;;  %v454_v33 = vmul.f32 0.0727021, %v1606_v1 }
  0x40   : > { %370 = vrot.lane.b32.xlu0 %v1640_v11, %s1501_s20  ;;  %v415_v28 = vsel %vm182_vm0, %v413_v25, %v414_v24  ;;  %2886 = vst [vmem:[#allocation19_spill] sm:$0xff] %v1692_v31  ;;  %v418_v34 = vsel %vm182_vm0, %v416_v30, %v417_v29  ;;  %v420_v35 = vrot.slane %v1686_v27, 1  ;;  %v419_v36 = vrot.slane %v1692_v31, 1  ;;  %s1504_s22 = smov 124   ;;  %s1379_s23 = sshll.u32 %s1369_s10, 2 }
  0x41   : > { %v457_v37 = vmul.f32 0.0727021, %v1608_v2  ;;  %v456_v38 = vmul.f32 0.0727021, %v1604_v0  ;;  %v1703_v39 = vrot.slane %v455_v32, 2  ;;  %v470_v40 = vrot.slane %v454_v33, 2 }
  0x42   : > { %v459_v41 = vmul.f32 0.0727021, %v1628_v8  ;;  %v421_v42 = vsel %vm182_vm0, %v419_v36, %v420_v35  ;;  %v458_v43 = vmul.f32 0.0727021, %v1630_v9  ;;  %v461_v46 = vmul.f32 0.0727021, %v1642_v12 }
  0x43   : > { %376 = vrot.lane.b32.xlu1 %v1657_v16, %s1501_s20  ;;  %2887 = vst [vmem:[#allocation20_spill] sm:$0xff] %v1703_v39  ;;  %v1710_v44 = vrot.slane %v457_v37, 2  ;;  %v473_v45 = vrot.slane %v456_v38, 2  ;;  %v1714_v47 = vmul.f32 0.09143517, %v1616_v5  ;;  %v1718_v48 = vsel %vm227_vm1, %v470_v40, %v1703_v39  ;;  %p136_p7 = scmp.lt.s32.totalorder %s1379_s23, 7 }
  0x44   : > { %374 = vrot.lane.b32.xlu0 %v1660_v17, %s1501_s20  ;;  %2889 = vst [vmem:[#allocation22_spill] sm:$0xff] %v1718_v48  ;;  %v460_v49 = vmul.f32 0.0727021, %v1644_v13  ;;  %v1722_v50 = vmul.f32 0.09143517, %v1606_v1  ;;  %v1729_v52 = vrot.slane %v459_v41, 2 }
  0x45   : > { %2888 = vst [vmem:[#allocation21_spill] sm:$0xff] %v1710_v44  ;;  %v1725_v51 = vmul.f32 0.09143517, %v1608_v2  ;;  %v2788_v53 = vrot.slane %v1714_v47, 1  ;;  %v1733_v54 = vmul.f32 0.09143517, %v1604_v0  ;;  %v1775_v32 = vsel %vm227_vm1, %v473_v45, %v1710_v44 }
  0x46   : > { %2890 = vst [vmem:[#allocation23_spill] sm:$0xff] %v1729_v52  ;;  %v1736_v55 = vmul.f32 0.09143517, %v1628_v8  ;;  %v698_v56 = vrot.slane %v1722_v50, 1  ;;  %v1741_v58 = vmul.f32 0.09143517, %v1630_v9 }
  0x47   : > { %424 = vrot.lane.b32.xlu1 %v411_v18, %s1501_s20  ;;  %v2787_v57 = vrot.slane %v1725_v51, 1  ;;  %v1744_v59 = vmul.f32 0.09143517, %v1642_v12  ;;  %v701_v60 = vrot.slane %v1733_v54, 1  ;;  %v1749_v62 = vmul.f32 0.09143517, %v1644_v13 }
  0x48   : > { %422 = vrot.lane.b32.xlu0 %v412_v23, %s1501_s20  ;;  %v2786_v61 = vrot.slane %v1736_v55, 1  ;;  %v1752_v63 = vmul.f32 0.11699268, %v1616_v5  ;;  %v1757_v18 = vsel %vm182_vm0, %v698_v56, %v2788_v53  ;;  %v704_v19 = vrot.slane %v1741_v58, 1  ;;  %2891 = vst [vmem:[#allocation24_spill] sm:$0xff] %v1775_v32  ;;  %s3111_s23 = smov (!%p136_p7, %s1379_s23), 7 }
  0x49   : > { %v2785_v23 = vrot.slane %v1744_v59, 1  ;;  %v476_v25 = vrot.slane %v458_v43, 2  ;;  %v1798_v38 = vmul.f32 0.048571844, %v1616_v5  ;;  %v213_v41 = vmul.f32 0.01744664, %v1604_v0 }
  0x4a   : > { %v2784_v30 = vrot.slane %v1752_v63, 2  ;;  %v1780_v33 = vsel %vm182_vm0, %v704_v19, %v2786_v61  ;;  %v1807_v43 = vrot.slane %v461_v46, 2  ;;  %v479_v45 = vrot.slane %v460_v49, 2  ;;  %s1386_s24 = sshll.u32 %s3111_s23, 4 }
  0x4b   : > { %428 = vrot.lane.b32.xlu1 %v414_v24, %s1501_s20  ;;  %v742_v24 = vmul.f32 0.11699268, %v1606_v1  ;;  %v1810_v56 = vmul.f32 0.048571844, %v1606_v1  ;;  %v212_v19 = vmul.f32 0.01744664, %v1616_v5  ;;  %s2747_s10 = scalar_lea.vmem %s2783_s1, %s1386_s24 }
  0x4c   : > { %426 = vrot.lane.b32.xlu0 %v415_v28, %s1501_s20  ;;  %v1769_v28 = vsel %vm182_vm0, %v701_v60, %v2787_v57  ;;  %2894 = vst [vmem:[#allocation27_spill] sm:$0xff] %v1807_v43  ;;  %v231_v60 = vrot.slane %v213_v41, 2  ;;  %v531_v46 = vrot.slane %v1798_v38, 3  ;;  %v1821_v49 = vmul.f32 0.048571844, %v1608_v2 }
  0x4d   : > { %v1836_v41 = vmul.f32 0.048571844, %v1628_v8  ;;  %v1844_v61 = vrot.slane %v212_v19, 2  ;;  %v1848_v57 = vmul.f32 0.048571844, %v1630_v9  ;;  %vm1292_vm4 = vcmask 93184  }
  0x4e   : > { %v744_v53 = vmul.f32 0.11699268, %v1604_v0  ;;  %v534_v19 = vrot.slane %v1821_v49, 3  ;;  %v1914_v15 = vmul.f32 0.019821266, %v1606_v1  ;;  %vm1290_vm5 = vcmask 97280  }
  0x4f   : > { %432 = vrot.lane.b32.xlu1 %v417_v29, %s1501_s20  ;;  %v707_v29 = vrot.slane %v1749_v62, 1  ;;  %2897 = vst [vmem:[#allocation30_spill] sm:$0xff] %v1844_v61 }
  0x50   : > { %430 = vrot.lane.b32.xlu0 %v418_v34, %s1501_s20  ;;  %v758_v34 = vrot.slane %v742_v24, 2  ;;  %v2796_v24 = vrot.slane %v1714_v47, 3  ;;  %2900 = vst [vmem:[#allocation33_spill] sm:$0xff] %v1914_v15 }
  0x51   : > { %v1786_v36 = vsel %vm182_vm0, %v707_v29, %v2785_v23  ;;  %v802_v29 = vrot.slane %v1722_v50, 3  ;;  %v1832_v50 = vsel %vm227_vm1, %v479_v45, %v1807_v43  ;;  %v1842_v23 = vmul.f32 0.04364928, %v1606_v1 }
  0x52   : > { %v1791_v37 = vsel %vm227_vm1, %v758_v34, %v2784_v30  ;;  %2896 = vst [vmem:[#allocation29_spill] sm:$0xff] %v1832_v50  ;;  %v1839_v30 = vmul.f32 0.04364928, %v1616_v5  ;;  %v1851_v45 = vmul.f32 0.11699268, %v1608_v2 }
  0x53   : > { %436 = vrot.lane.b32.xlu1 %v420_v35, %s1501_s20  ;;  %v214_v35 = vmul.f32 0.01744664, %v1608_v2 }
  0x54   : > { %434 = vrot.lane.b32.xlu0 %v421_v42, %s1501_s20  ;;  %v1805_v42 = vsel %vm227_vm1, %v476_v25, %v1729_v52  ;;  %v1824_v25 = vmul.f32 0.048571844, %v1604_v0  ;;  %v2804_v27 = vrot.slane %v1839_v30, 4 }
  0x55   : > { %v1800_v40 = vrot.slane %v214_v35, 2  ;;  %2893 = vst [vmem:[#allocation26_spill] sm:$0xff] %v1805_v42  ;;  %v530_v35 = vrot.slane %v1810_v56, 3 }
  0x56   : > { %v533_v22 = vrot.slane %v1824_v25, 3 }
  0x57   : > { %484 = vrot.lane.b32.xlu1 %v1703_v39, %s1501_s20  ;;  %2892 = vst [vmem:[#allocation25_spill] sm:$0xff] %v1800_v40  ;;  %v1828_v34 = vsel %vm227_vm1, %v231_v60, %v1800_v40  ;;  %v211_v60 = vmul.f32 0.01744664, %v1606_v1  ;;  %v1857_v40 = vsel %vm272_vm2, %v802_v29, %v2796_v24  ;;  %v532_v26 = vsel %vm272_vm2, %v530_v35, %v531_v46 }
  0x58   : > { %482 = vrot.lane.b32.xlu0 %v1718_v48, %s1501_s20  ;;  %2895 = vst [vmem:[#allocation28_spill] sm:$0xff] %v1828_v34  ;;  %v846_v34 = vrot.slane %v1842_v23, 4  ;;  %v2799_v29 = vrot.slane %v1851_v45, 2  ;;  %v761_v24 = vrot.slane %v744_v53, 2  ;;  %v1881_v35 = vmul.f32 0.048571844, %v1642_v12 }
  0x59   : > { %v228_v31 = vrot.slane %v211_v60, 2  ;;  %v1884_v60 = vmul.f32 0.11699268, %v1628_v8  ;;  %v746_v53 = vmul.f32 0.11699268, %v1630_v9 }
  0x5a   : > { %v1876_v20 = vsel %vm227_vm1, %v761_v24, %v2799_v29  ;;  %v535_v24 = vsel %vm272_vm2, %v533_v22, %v534_v19  ;;  %v537_v29 = vrot.slane %v1836_v41, 3  ;;  %v218_v48 = vmul.f32 0.01744664, %v1642_v12 }
  0x5b   : > { %488 = vrot.lane.b32.xlu1 %v1710_v44, %s1501_s20  ;;  %v1871_v21 = vsel %vm227_vm1, %v228_v31, %v1844_v61  ;;  %v1890_v31 = vsel %vm317_vm3, %v846_v34, %v2804_v27  ;;  %v2809_v61 = vrot.slane %v1884_v60, 2  ;;  %v1903_v34 = vmul.f32 0.019821266, %v1616_v5 }
  0x5c   : > { %486 = vrot.lane.b32.xlu0 %v1775_v32, %s1501_s20  ;;  %2898 = vst [vmem:[#allocation31_spill] sm:$0xff] %v1871_v21  ;;  %v764_v21 = vrot.slane %v746_v53, 2  ;;  %v215_v5 = vmul.f32 0.01744664, %v1630_v9  ;;  %v1939_v32 = vmul.f32 0.019821266, %v1630_v9 }
  0x5d   : > { %2899 = vst [vmem:[#allocation32_spill] sm:$0xff] %v1903_v34  ;;  %v591_v14 = vrot.slane %v1903_v34, 4  ;;  %v2842_v34 = vrot.slane %v1725_v51, 3 }
  0x5e   : > { %v1908_v22 = vsel %vm227_vm1, %v764_v21, %v2809_v61  ;;  %v1925_v21 = vmul.f32 0.019821266, %v1604_v0  ;;  %v748_v61 = vmul.f32 0.11699268, %v1644_v13 }
  0x5f   : > { %492 = vrot.lane.b32.xlu1 %v1729_v52, %s1501_s20 }
  0x60   : > { %490 = vrot.lane.b32.xlu0 %v1805_v42, %s1501_s20  ;;  %2903 = vst [vmem:[#allocation36_spill] sm:$0xff] %v1925_v21  ;;  %v234_v42 = vrot.slane %v215_v5, 2  ;;  %v593_v5 = vrot.slane %v1925_v21, 4  ;;  %v1967_v21 = vmul.f32 0.04364928, %v1608_v2 }
  0x63   : > { %496 = vrot.lane.b32.xlu1 %v1807_v43, %s1501_s20  ;;  %v540_v43 = vrot.slane %v1881_v35, 3 }
  0x64   : > { %494 = vrot.lane.b32.xlu0 %v1832_v50, %s1501_s20  ;;  %v216_v50 = vmul.f32 0.01744664, %v1628_v8 }
  0x67   : > { %544 = vrot.lane.b32.xlu1 %v531_v46, %s1501_s20  ;;  %v536_v46 = vrot.slane %v1848_v57, 3 }
  0x68   : > { %542 = vrot.lane.b32.xlu0 %v532_v26, %s1501_s20  ;;  %v1896_v26 = vmul.f32 0.048571844, %v1644_v13 }
  0x69   : > { %v538_v27 = vsel %vm272_vm2, %v536_v46, %v537_v29  ;;  %v1928_v46 = vmul.f32 0.11699268, %v1642_v12 }
  0x6a   : > { %v539_v53 = vrot.slane %v1896_v26, 3 }
  0x6b   : > { %548 = vrot.lane.b32.xlu1 %v534_v19, %s1501_s20  ;;  %v1917_v19 = vmul.f32 0.019821266, %v1608_v2  ;;  %v2823_v52 = vrot.slane %v1928_v46, 2  ;;  %v2843_v2 = vrot.slane %v1736_v55, 3 }
  0x6c   : > { %546 = vrot.lane.b32.xlu0 %v535_v24, %s1501_s20  ;;  %v1919_v24 = vrot.slane %v216_v50, 2  ;;  %v541_v1 = vsel %vm272_vm2, %v539_v53, %v540_v43  ;;  %v590_v50 = vrot.slane %v1914_v15, 4 }
  0x6d   : > { %2901 = vst [vmem:[#allocation34_spill] sm:$0xff] %v1917_v19  ;;  %v594_v53 = vrot.slane %v1917_v19, 4 }
  0x6e   : > { %2902 = vst [vmem:[#allocation35_spill] sm:$0xff] %v1919_v24  ;;  %v1943_v44 = vsel %vm227_vm1, %v234_v42, %v1919_v24  ;;  %v592_v39 = vsel %vm317_vm3, %v590_v50, %v591_v14  ;;  %v1957_v42 = vmul.f32 0.019821266, %v1642_v12 }
  0x6f   : > { %552 = vrot.lane.b32.xlu1 %v537_v29, %s1501_s20  ;;  %v767_v29 = vrot.slane %v748_v61, 2  ;;  %2905 = vst [vmem:[#allocation38_spill] sm:$0xff] %v1943_v44  ;;  %v217_v44 = vmul.f32 0.01744664, %v1644_v13  ;;  %v595_v50 = vsel %vm317_vm3, %v593_v5, %v594_v53 }
  0x70   : > { %550 = vrot.lane.b32.xlu0 %v538_v27, %s1501_s20  ;;  %v1936_v27 = vmul.f32 0.019821266, %v1628_v8 }
  0x71   : > { %v1952_v61 = vsel %vm227_vm1, %v767_v29, %v2823_v52  ;;  %v636_v29 = vmul.f32 0.04364928, %v1604_v0  ;;  %v596_v52 = vrot.slane %v1939_v32, 4  ;;  %v237_v19 = vrot.slane %v217_v44, 2 }
  0x72   : > { %2904 = vst [vmem:[#allocation37_spill] sm:$0xff] %v1936_v27  ;;  %v597_v24 = vrot.slane %v1936_v27, 4  ;;  %v805_v27 = vrot.slane %v1733_v54, 3  ;;  %v600_v0 = vrot.slane %v1957_v42, 4 }
  0x73   : > { %556 = vrot.lane.b32.xlu1 %v540_v43, %s1501_s20  ;;  %v1960_v43 = vmul.f32 0.019821266, %v1644_v13  ;;  %v849_v15 = vrot.slane %v636_v29, 4 }
  0x74   : > { %554 = vrot.lane.b32.xlu0 %v541_v1, %s1501_s20  ;;  %v1962_v1 = vrot.slane %v218_v48, 2  ;;  %v638_v48 = vmul.f32 0.04364928, %v1630_v9  ;;  %v1986_v9 = vmul.f32 0.04364928, %v1628_v8  ;;  %v1991_v54 = vsel %vm272_vm2, %v805_v27, %v2842_v34 }
  0x75   : > { %2906 = vst [vmem:[#allocation39_spill] sm:$0xff] %v1960_v43  ;;  %v598_v8 = vsel %vm317_vm3, %v596_v52, %v597_v24  ;;  %v2909_v27 = vrot.slane %v1967_v21, 4  ;;  %v2910_v52 = vrot.slane %v1744_v59, 3 }
  0x76   : > { %2907 = vst [vmem:[#allocation40_spill] sm:$0xff] %v1962_v1  ;;  %v1983_v5 = vsel %vm227_vm1, %v237_v19, %v1962_v1  ;;  %v852_v44 = vrot.slane %v638_v48, 4  ;;  %v923_v1 = vrot.slane %v1798_v38, 1 }
  0x77   : > { %604 = vrot.lane.b32.xlu1 %v591_v14, %s1501_s20  ;;  %v599_v14 = vrot.slane %v1960_v43, 4  ;;  %2908 = vst [vmem:[#allocation41_spill] sm:$0xff] %v1983_v5  ;;  %v808_v5 = vrot.slane %v1741_v58, 3  ;;  %v811_v43 = vrot.slane %v1749_v62, 3  ;;  %v2006_v34 = vsel %vm317_vm3, %v849_v15, %v2909_v27 }
  0x78   : > { %602 = vrot.lane.b32.xlu0 %v592_v39, %s1501_s20  ;;  %v640_v39 = vmul.f32 0.04364928, %v1644_v13  ;;  %v1997_v13 = vmul.f32 0.04364928, %v1642_v12  ;;  %v922_v27 = vrot.slane %v1810_v56, 1 }
  0x79   : > { %v2019_v62 = vsel %vm272_vm2, %v811_v43, %v2910_v52  ;;  %v925_v43 = vrot.slane %v1824_v25, 1  ;;  %v929_v52 = vrot.slane %v1836_v41, 1  ;;  %v931_v25 = vrot.slane %v1896_v26, 1  ;;  %v2957_v41 = vld [vmem:[#allocation20_spill] sm:$0xff] }
  0x7a   : > { %v855_v19 = vrot.slane %v640_v39, 4  ;;  %v856_v58 = vrot.slane %v1997_v13, 4  ;;  %v2041_v56 = vsel %vm182_vm0, %v922_v27, %v923_v1  ;;  %v2847_v26 = vrot.slane %v1626_v7, 4 }
  0x7b   : > { %608 = vrot.lane.b32.xlu1 %v594_v53, %s1501_s20  ;;  %v853_v53 = vrot.slane %v1986_v9, 4  ;;  %v2846_v27 = vrot.slane %v1623_v6, 4 }
  0x7c   : > { %606 = vrot.lane.b32.xlu0 %v595_v50, %s1501_s20  ;;  %v2012_v50 = vsel %vm272_vm2, %v808_v5, %v2843_v2  ;;  %v2032_v5 = vsel %vm317_vm3, %v855_v19, %v856_v58  ;;  %v926_v2 = vrot.slane %v1821_v49, 1 }
  0x7d   : > { %v2024_v15 = vsel %vm317_vm3, %v852_v44, %v853_v53  ;;  %v601_v44 = vsel %vm317_vm3, %v599_v14, %v600_v0 }
  0x7e   : > { %v2048_v19 = vsel %vm182_vm0, %v925_v43, %v926_v2  ;;  %v2912_v43 = vrot.slane %v1725_v51, 1 }
  0x7f   : > { %612 = vrot.lane.b32.xlu1 %v597_v24, %s1501_s20  ;;  %v932_v24 = vrot.slane %v1881_v35, 1  ;;  %v2961_v35 = vld [vmem:[#allocation21_spill] sm:$0xff] }
  0x80   : > { %610 = vrot.lane.b32.xlu0 %v598_v8, %s1501_s20  ;;  %v928_v8 = vrot.slane %v1848_v57, 1 }
  0x81   : > { %v2061_v57 = vsel %vm182_vm0, %v931_v25, %v932_v24  ;;  %v2915_v25 = vrot.slane %v1752_v63, 2  ;;  %v2917_v63 = vrot.slane %v1884_v60, 2  ;;  %v2919_v60 = vrot.slane %v1714_v47, 3 }
  0x82   : > { %v2054_v14 = vsel %vm182_vm0, %v928_v8, %v929_v52  ;;  %v2913_v8 = vrot.slane %v1736_v55, 1 }
  0x83   : > { %616 = vrot.lane.b32.xlu1 %v600_v0, %s1501_s20  ;;  %v1042_v0 = vrot.slane %v1614_v4, 4  ;;  %v2845_v4 = vrot.slane %v1637_v10, 4 }
  0x84   : > { %614 = vrot.lane.b32.xlu0 %v601_v44, %s1501_s20  ;;  %v2844_v44 = vrot.slane %v1657_v16, 4 }
  0x87   : > { %652 = vrot.lane.b32.xlu1 %v1839_v30, %s1502_s15 }
  0x88   : > { %650 = vrot.lane.b32.xlu0 %v1842_v23, %s1502_s15  ;;  %v1045_v23 = vrot.slane %v1611_v3, 4 }
  0x8a   : > { %v2095_v3 = vsel %vm317_vm3, %v1045_v23, %v2846_v27  ;;  %v2916_v23 = vrot.slane %v1851_v45, 2  ;;  %v2918_v45 = vrot.slane %v1928_v46, 2  ;;  %v2920_v46 = vrot.slane %v1725_v51, 3  ;;  %v2972_v27 = vld [vmem:[#allocation29_spill] sm:$0xff] }
  0x8b   : > { %656 = vrot.lane.b32.xlu1 %v1967_v21, %s1502_s15  ;;  %v2926_v51 = vrot.slane %v1744_v59, 3 }
  0x8c   : > { %654 = vrot.lane.b32.xlu0 %v636_v29, %s1502_s15  ;;  %v2083_v29 = vsel %vm317_vm3, %v1042_v0, %v2847_v26 }
  0x8f   : > { %660 = vrot.lane.b32.xlu1 %v1986_v9, %s1502_s15  ;;  %v2935_v9 = vld [vmem:[#allocation32_spill] sm:$0xff] }
  0x90   : > { %658 = vrot.lane.b32.xlu0 %v638_v48, %s1502_s15  ;;  %v2911_v48 = vrot.slane %v1714_v47, 1  ;;  %v2923_v47 = vrot.slane %v1736_v55, 3  ;;  %v2927_v55 = vrot.slane %v1839_v30, 4 }
  0x93   : > { %664 = vrot.lane.b32.xlu1 %v1997_v13, %s1502_s15  ;;  %v2939_v13 = vld [vmem:[#allocation34_spill] sm:$0xff] }
  0x94   : > { %662 = vrot.lane.b32.xlu0 %v640_v39, %s1502_s15  ;;  %v1048_v39 = vrot.slane %v1640_v11, 4 }
  0x96   : > { %v2107_v11 = vsel %vm317_vm3, %v1048_v39, %v2845_v4 }
  0x97   : > { %712 = vrot.lane.b32.xlu1 %v2911_v48, %s1502_s15 }
  0x98   : > { %710 = vrot.lane.b32.xlu0 %v1757_v18, %s1502_s15  ;;  %v1051_v18 = vrot.slane %v1660_v17, 4  ;;  %v2914_v17 = vrot.slane %v1744_v59, 1  ;;  %v2930_v59 = vrot.slane %v1967_v21, 4 }
  0x9b   : > { %716 = vrot.lane.b32.xlu1 %v2912_v43, %s1502_s15 }
  0x9c   : > { %714 = vrot.lane.b32.xlu0 %v1769_v28, %s1502_s15  ;;  %v2117_v28 = vsel %vm317_vm3, %v1051_v18, %v2844_v44 }
  0x9f   : > { %720 = vrot.lane.b32.xlu1 %v2913_v8, %s1502_s15 }
  0xa0   : > { %718 = vrot.lane.b32.xlu0 %v1780_v33, %s1502_s15 }
  0xa3   : > { %724 = vrot.lane.b32.xlu1 %v2914_v17, %s1502_s15 }
  0xa4   : > { %722 = vrot.lane.b32.xlu0 %v1786_v36, %s1502_s15 }
  0xa7   : > { %772 = vrot.lane.b32.xlu1 %v2915_v25, %s1502_s15 }
  0xa8   : > { %770 = vrot.lane.b32.xlu0 %v1791_v37, %s1502_s15 }
  0xa9   : > { %v2129_v33 = vpop.permute.xlu1 %366 }
  0xaa   : > { %v2131_v0 = vpop.permute.xlu0 %362 }
  0xab   : > { %776 = vrot.lane.b32.xlu1 %v2916_v23, %s1502_s15 }
  0xac   : > { %774 = vrot.lane.b32.xlu0 %v1876_v20, %s1502_s15 }
  0xad   : > { %v2138_v48 = vpop.permute.xlu1 %368 }
  0xae   : > { %v2140_v36 = vpop.permute.xlu0 %364 }
  0xaf   : > { %780 = vrot.lane.b32.xlu1 %v2917_v63, %s1502_s15 }
  0xb0   : > { %778 = vrot.lane.b32.xlu0 %v1908_v22, %s1502_s15 }
  0xb1   : > { %v2147_v37 = vpop.permute.xlu1 %372 }
  0xb2   : > { %v2149_v39 = vpop.permute.xlu0 %370 }
  0xb3   : > { %784 = vrot.lane.b32.xlu1 %v2918_v45, %s1502_s15 }
  0xb4   : > { %782 = vrot.lane.b32.xlu0 %v1952_v61, %s1502_s15 }
  0xb5   : > { %v2156_v20 = vpop.permute.xlu1 %376 }
  0xb6   : > { %v2158_v43 = vpop.permute.xlu0 %374 }
  0xb7   : > { %816 = vrot.lane.b32.xlu1 %v2919_v60, %s1502_s15 }
  0xb8   : > { %814 = vrot.lane.b32.xlu0 %v1857_v40, %s1502_s15 }
  0xb9   : > { %v2165_v22 = vpop.permute.xlu1 %424 }
  0xba   : > { %v2167_v18 = vpop.permute.xlu0 %422 }
  0xbb   : > { %820 = vrot.lane.b32.xlu1 %v2920_v46, %s1502_s15  ;;  %v2943_v46 = vld [vmem:[#allocation37_spill] sm:$0xff] }
  0xbc   : > { %818 = vrot.lane.b32.xlu0 %v1991_v54, %s1502_s15 }
  0xbd   : > { %v2174_v61 = vpop.permute.xlu1 %428 }
  0xbe   : > { %2921 = vst [vmem:[#allocation42_spill] sm:$0xff] %v2174_v61  ;;  %v2176_v8 = vpop.permute.xlu0 %426 }
  0xbf   : > { %2922 = vst [vmem:[#allocation43_spill] sm:$0xff] %v2176_v8  ;;  %824 = vrot.lane.b32.xlu1 %v2923_v47, %s1502_s15 }
  0xc0   : > { %822 = vrot.lane.b32.xlu0 %v2012_v50, %s1502_s15 }
  0xc1   : > { %v2183_v40 = vpop.permute.xlu1 %432 }
  0xc2   : > { %2924 = vst [vmem:[#allocation44_spill] sm:$0xff] %v2183_v40  ;;  %v2185_v17 = vpop.permute.xlu0 %430 }
  0xc3   : > { %2925 = vst [vmem:[#allocation45_spill] sm:$0xff] %v2185_v17  ;;  %828 = vrot.lane.b32.xlu1 %v2926_v51, %s1502_s15 }
  0xc4   : > { %826 = vrot.lane.b32.xlu0 %v2019_v62, %s1502_s15 }
  0xc5   : > { %v2192_v54 = vpop.permute.xlu1 %436 }
  0xc6   : > { %v2194_v25 = vpop.permute.xlu0 %434 }
  0xc7   : > { %860 = vrot.lane.b32.xlu1 %v2927_v55, %s1502_s15  ;;  %v2946_v55 = vld [vmem:[#allocation39_spill] sm:$0xff] }
  0xc8   : > { %858 = vrot.lane.b32.xlu0 %v1890_v31, %s1502_s15 }
  0xc9   : > { %v2201_v50 = vpop.permute.xlu1 %484 }
  0xca   : > { %2928 = vst [vmem:[#allocation46_spill] sm:$0xff] %v2201_v50  ;;  %v2203_v23 = vpop.permute.xlu0 %482  ;;  %v3025_v50 = vld [vmem:[#allocation41_spill] sm:$0xff] }
  0xcb   : > { %2929 = vst [vmem:[#allocation47_spill] sm:$0xff] %v2203_v23  ;;  %864 = vrot.lane.b32.xlu1 %v2930_v59, %s1502_s15 }
  0xcc   : > { %862 = vrot.lane.b32.xlu0 %v2006_v34, %s1502_s15 }
  0xcd   : > { %v2210_v62 = vpop.permute.xlu1 %488 }
  0xce   : > { %2931 = vst [vmem:[#allocation48_spill] sm:$0xff] %v2210_v62  ;;  %v2212_v63 = vpop.permute.xlu0 %486 }
  0xcf   : > { %2932 = vst [vmem:[#allocation49_spill] sm:$0xff] %v2212_v63  ;;  %868 = vrot.lane.b32.xlu1 %v853_v53, %s1502_s15  ;;  %v2936_v53 = vld [vmem:[#allocation33_spill] sm:$0xff] }
  0xd0   : > { %866 = vrot.lane.b32.xlu0 %v2024_v15, %s1502_s15 }
  0xd1   : > { %v2219_v30 = vpop.permute.xlu1 %492 }
  0xd2   : > { %2933 = vst [vmem:[#allocation50_spill] sm:$0xff] %v2219_v30  ;;  %v2221_v31 = vpop.permute.xlu0 %490  ;;  %v2992_v30 = vld [vmem:[#allocation18_spill] sm:$0xff] }
  0xd3   : > { %2934 = vst [vmem:[#allocation51_spill] sm:$0xff] %v2221_v31  ;;  %872 = vrot.lane.b32.xlu1 %v856_v58, %s1502_s15  ;;  %v2940_v58 = vld [vmem:[#allocation36_spill] sm:$0xff]  ;;  %v1008_v17 = vrot.slane %v2992_v30, 3 }
  0xd4   : > { %870 = vrot.lane.b32.xlu0 %v2032_v5, %s1502_s15 }
  0xd5   : > { %v2228_v34 = vpop.permute.xlu1 %496 }
  0xd6   : > { %v2230_v21 = vpop.permute.xlu0 %494 }
  0xd7   : > { %892 = vrot.lane.b32.xlu1 %v2935_v9, %s1503_s21 }
  0xd8   : > { %890 = vrot.lane.b32.xlu0 %v2936_v53, %s1503_s21 }
  0xd9   : > { %v2236_v15 = vpop.permute.xlu1 %544 }
  0xda   : > { %2937 = vst [vmem:[#allocation32_spill] sm:$0xff] %v2236_v15  ;;  %v2238_v45 = vpop.permute.xlu0 %542 }
  0xdb   : > { %2938 = vst [vmem:[#allocation33_spill] sm:$0xff] %v2238_v45  ;;  %896 = vrot.lane.b32.xlu1 %v2939_v13, %s1503_s21  ;;  %v2438_v45 = vmul.f32 0.009963972, %v1642_v12 }
  0xdc   : > { %894 = vrot.lane.b32.xlu0 %v2940_v58, %s1503_s21  ;;  %v2965_v58 = vld [vmem:[#allocation23_spill] sm:$0xff] }
  0xdd   : > { %v2244_v5 = vpop.permute.xlu1 %548  ;;  %3008 = vst [vmem:[#allocation66_spill] sm:$0xff] %v2438_v45 }
  0xde   : > { %2941 = vst [vmem:[#allocation34_spill] sm:$0xff] %v2244_v5  ;;  %v2246_v60 = vpop.permute.xlu0 %546 }
  0xdf   : > { %2942 = vst [vmem:[#allocation36_spill] sm:$0xff] %v2246_v60  ;;  %900 = vrot.lane.b32.xlu1 %v2943_v46, %s1503_s21  ;;  %v2966_v46 = vld [vmem:[#allocation26_spill] sm:$0xff]  ;;  %v2990_v60 = vld [vmem:[#allocation11_spill] sm:$0xff] }
  0xe0   : > { %898 = vrot.lane.b32.xlu0 %v1939_v32, %s1503_s21 }
  0xe1   : > { %v2252_v47 = vpop.permute.xlu1 %552 }
  0xe2   : > { %2944 = vst [vmem:[#allocation37_spill] sm:$0xff] %v2252_v47  ;;  %v2254_v51 = vpop.permute.xlu0 %550 }
  0xe3   : > { %2945 = vst [vmem:[#allocation52_spill] sm:$0xff] %v2254_v51  ;;  %904 = vrot.lane.b32.xlu1 %v1957_v42, %s1503_s21 }
  0xe4   : > { %902 = vrot.lane.b32.xlu0 %v2946_v55, %s1503_s21  ;;  %v2967_v55 = vld [vmem:[#allocation12_spill] sm:$0xff] }
  0xe5   : > { %v2260_v59 = vpop.permute.xlu1 %556 }
  0xe6   : > { %2947 = vst [vmem:[#allocation39_spill] sm:$0xff] %v2260_v59  ;;  %v2262_v9 = vpop.permute.xlu0 %554  ;;  %v3024_v59 = vld [vmem:[#allocation40_spill] sm:$0xff] }
  0xe7   : > { %2948 = vst [vmem:[#allocation53_spill] sm:$0xff] %v2262_v9  ;;  %936 = vrot.lane.b32.xlu1 %v923_v1, %s1503_s21 }
  0xe8   : > { %934 = vrot.lane.b32.xlu0 %v2041_v56, %s1503_s21 }
  0xe9   : > { %v2269_v32 = vpop.permute.xlu1 %604 }
  0xea   : > { %2949 = vst [vmem:[#allocation54_spill] sm:$0xff] %v2269_v32  ;;  %v2271_v53 = vpop.permute.xlu0 %602 }
  0xeb   : > { %2950 = vst [vmem:[#allocation55_spill] sm:$0xff] %v2271_v53  ;;  %940 = vrot.lane.b32.xlu1 %v926_v2, %s1503_s21 }
  0xec   : > { %938 = vrot.lane.b32.xlu0 %v2048_v19, %s1503_s21 }
  0xed   : > { %v2278_v42 = vpop.permute.xlu1 %608 }
  0xee   : > { %2951 = vst [vmem:[#allocation56_spill] sm:$0xff] %v2278_v42  ;;  %v2280_v13 = vpop.permute.xlu0 %606 }
  0xef   : > { %2952 = vst [vmem:[#allocation57_spill] sm:$0xff] %v2280_v13  ;;  %944 = vrot.lane.b32.xlu1 %v929_v52, %s1503_s21  ;;  %v2958_v52 = vld [vmem:[#allocation22_spill] sm:$0xff] }
  0xf0   : > { %942 = vrot.lane.b32.xlu0 %v2054_v14, %s1503_s21 }
  0xf1   : > { %v2287_v38 = vpop.permute.xlu1 %612 }
  0xf2   : > { %2953 = vst [vmem:[#allocation58_spill] sm:$0xff] %v2287_v38  ;;  %v2289_v1 = vpop.permute.xlu0 %610  ;;  %v2974_v38 = vld [vmem:[#allocation15_spill] sm:$0xff] }
  0xf3   : > { %2954 = vst [vmem:[#allocation59_spill] sm:$0xff] %v2289_v1  ;;  %948 = vrot.lane.b32.xlu1 %v932_v24, %s1503_s21  ;;  %v2962_v24 = vld [vmem:[#allocation24_spill] sm:$0xff] }
  0xf4   : > { %946 = vrot.lane.b32.xlu0 %v2061_v57, %s1503_s21 }
  0xf5   : > { %v2296_v2 = vpop.permute.xlu1 %616 }
  0xf6   : > { %2955 = vst [vmem:[#allocation60_spill] sm:$0xff] %v2296_v2  ;;  %v2298_v49 = vpop.permute.xlu0 %614 }
  0xf7   : > { %2956 = vst [vmem:[#allocation61_spill] sm:$0xff] %v2298_v49  ;;  %968 = vrot.lane.b32.xlu1 %v2957_v41, %s1503_s21  ;;  %v999_v41 = vrot.slane %v2967_v55, 3  ;;  %v2434_v49 = vmul.f32 0.012189843, %v2990_v60 }
  0xf8   : > { %966 = vrot.lane.b32.xlu0 %v2958_v52, %s1503_s21  ;;  %v2968_v52 = vld [vmem:[#allocation13_spill] sm:$0xff] }
  0xf9   : > { %v2304_v56 = vpop.permute.xlu1 %652  ;;  %v998_v44 = vrot.slane %v2968_v52, 3  ;;  %v2977_v52 = vld [vmem:[#allocation7_spill] sm:$0xff]  ;;  %3007 = vst [vmem:[#allocation65_spill] sm:$0xff] %v2434_v49 }
  0xfa   : > { %2959 = vst [vmem:[#allocation20_spill] sm:$0xff] %v2304_v56  ;;  %v2306_v19 = vpop.permute.xlu0 %650  ;;  %v2349_v51 = vmul.f32 0.009963972, %v2977_v52  ;;  %v2352_v47 = vmul.f32 0.0034758602, %v2977_v52 }
  0xfb   : > { %2960 = vst [vmem:[#allocation22_spill] sm:$0xff] %v2306_v19  ;;  %972 = vrot.lane.b32.xlu1 %v2961_v35, %s1503_s21  ;;  %v1000_v26 = vsel %vm272_vm2, %v998_v44, %v999_v41  ;;  %v2981_v44 = vld [vmem:[#allocation16_spill] sm:$0xff]  ;;  %v2370_v56 = vmul.f32 0.018659515, %v1642_v12  ;;  %v2455_v61 = vmul.f32 0.012189843, %v2977_v52 }
  0xfc   : > { %970 = vrot.lane.b32.xlu0 %v2962_v24, %s1503_s21  ;;  %v2971_v24 = vld [vmem:[#allocation27_spill] sm:$0xff] }
  0xfd   : > { %v2312_v14 = vpop.permute.xlu1 %656  ;;  %2989 = vst [vmem:[#allocation16_spill] sm:$0xff] %v2370_v56  ;;  %3011 = vst [vmem:[#allocation68_spill] sm:$0xff] %v2455_v61 }
  0xfe   : > { %2963 = vst [vmem:[#allocation21_spill] sm:$0xff] %v2312_v14  ;;  %v2314_v57 = vpop.permute.xlu0 %654 }
  0xff   : > { %2964 = vst [vmem:[#allocation24_spill] sm:$0xff] %v2314_v57  ;;  %976 = vrot.lane.b32.xlu1 %v2965_v58, %s1503_s21  ;;  %v2973_v58 = vld [vmem:[#allocation14_spill] sm:$0xff] }
 0x100   : > { %974 = vrot.lane.b32.xlu0 %v2966_v46, %s1503_s21  ;;  %v1002_v1 = vrot.slane %v2973_v58, 3  ;;  %v1001_v46 = vrot.slane %v2974_v38, 3  ;;  %v2982_v58 = vld [vmem:[#allocation17_spill] sm:$0xff] }
 0x101   : > { %v2322_v4 = vpop.permute.xlu1 %660  ;;  %v1004_v38 = vrot.slane %v2982_v58, 3  ;;  %v2993_v58 = vld [vmem:[#allocation19_spill] sm:$0xff] }
 0x102   : > { %2969 = vst [vmem:[#allocation23_spill] sm:$0xff] %v2322_v4  ;;  %v2324_v35 = vpop.permute.xlu0 %658  ;;  %v2338_v4 = vmul.f32 0.018659515, %v2977_v52  ;;  %v2472_v52 = vmul.f32 0.0034758602, %v1642_v12 }
 0x103   : > { %2970 = vst [vmem:[#allocation26_spill] sm:$0xff] %v2324_v35  ;;  %980 = vrot.lane.b32.xlu1 %v2971_v24, %s1503_s21  ;;  %v2979_v35 = vld [vmem:[#allocation5_spill] sm:$0xff]  ;;  %v1005_v24 = vrot.slane %v2981_v44, 3 }
 0x104   : > { %978 = vrot.lane.b32.xlu0 %v2972_v27, %s1503_s21  ;;  %2978 = vst [vmem:[#allocation27_spill] sm:$0xff] %v2338_v4  ;;  %v2341_v14 = vmul.f32 0.018659515, %v2979_v35  ;;  %v1003_v27 = vsel %vm272_vm2, %v1001_v46, %v1002_v1  ;;  %v2987_v46 = vld [vmem:[#allocation6_spill] sm:$0xff]  ;;  %v2997_v30 = vrot.slane %v2338_v4, 1 }
 0x105   : > { %v2333_v57 = vpop.permute.xlu1 %664  ;;  %v2365_v44 = vmul.f32 0.018659515, %v2987_v46  ;;  %v1006_v5 = vsel %vm272_vm2, %v1004_v38, %v1005_v24 }
 0x106   : > { %2975 = vst [vmem:[#allocation12_spill] sm:$0xff] %v2333_v57  ;;  %v2335_v55 = vpop.permute.xlu0 %662  ;;  %2980 = vst [vmem:[#allocation29_spill] sm:$0xff] %v2341_v14  ;;  %v186_v19 = vrot.slane %v2341_v14, 1  ;;  %v2385_v57 = vmul.f32 0.012189843, %v2979_v35 }
 0x107   : > { %2976 = vst [vmem:[#allocation13_spill] sm:$0xff] %v2335_v55  ;;  %1012 = vrot.lane.b32.xlu1 %v999_v41, %s1503_s21  ;;  %v2359_v41 = vmul.f32 0.009963972, %v2979_v35  ;;  %2988 = vst [vmem:[#allocation5_spill] sm:$0xff] %v2365_v44  ;;  %v1007_v55 = vrot.slane %v2993_v58, 3  ;;  %v183_v38 = vrot.slane %v2365_v44, 1 }
 0x108   : > { %1010 = vrot.lane.b32.xlu0 %v1000_v26, %s1503_s21  ;;  %v2985_v26 = vld [vmem:[#allocation8_spill] sm:$0xff]  ;;  %v188_v58 = vsel %vm182_vm0, %v186_v19, %v2997_v30  ;;  %v3000_v44 = vld [vmem:[#allocation10_spill] sm:$0xff] }
 0x109   : > { %v2354_v13 = vpop.permute.xlu1 %712  ;;  %v2362_v31 = vmul.f32 0.018659515, %v2985_v26  ;;  %2994 = vst [vmem:[#allocation8_spill] sm:$0xff] %v2385_v57  ;;  %v2399_v14 = vmul.f32 0.009963972, %v2985_v26  ;;  %v1009_v19 = vsel %vm272_vm2, %v1007_v55, %v1008_v17  ;;  %v205_v2 = vadd.f32 %v188_v58, %v2385_v57 }
 0x10a   : > { %2983 = vst [vmem:[#allocation14_spill] sm:$0xff] %v2354_v13  ;;  %v2356_v42 = vpop.permute.xlu0 %710  ;;  %v2373_v13 = vmul.f32 0.018659515, %v2990_v60  ;;  %v2410_v62 = vmul.f32 0.018659515, %v3000_v44 }
 0x10b   : > { %2984 = vst [vmem:[#allocation15_spill] sm:$0xff] %v2356_v42  ;;  %2986 = vst [vmem:[#allocation7_spill] sm:$0xff] %v2362_v31  ;;  %1016 = vrot.lane.b32.xlu1 %v1002_v1, %s1503_s21  ;;  %v2378_v42 = vmul.f32 0.0034758602, %v2979_v35  ;;  %v184_v63 = vrot.slane %v2362_v31, 1  ;;  %v193_v35 = vrot.slane %v2370_v56, 1 }
 0x10c   : > { %2991 = vst [vmem:[#allocation17_spill] sm:$0xff] %v2373_v13  ;;  %1014 = vrot.lane.b32.xlu0 %v1003_v27, %s1503_s21  ;;  %v276_v27 = vrot.slane %v2359_v41, 3  ;;  %v2998_v31 = vld [vmem:[#allocation9_spill] sm:$0xff]  ;;  %3001 = vst [vmem:[#allocation19_spill] sm:$0xff] %v2410_v62  ;;  %v2414_v30 = vmul.f32 0.0034758602, %v2985_v26 }
 0x10d   : > { %v2387_v53 = vpop.permute.xlu1 %716  ;;  %v2417_v56 = vmul.f32 0.012189843, %v2987_v46  ;;  %v2428_v40 = vmul.f32 0.012189843, %v2985_v26  ;;  %v2431_v55 = vmul.f32 0.012189843, %v1642_v12 }
 0x10e   : > { %2995 = vst [vmem:[#allocation6_spill] sm:$0xff] %v2387_v53  ;;  %v2389_v32 = vpop.permute.xlu0 %714  ;;  %v192_v53 = vrot.slane %v2373_v13, 1  ;;  %v185_v13 = vsel %vm182_vm0, %v183_v38, %v184_v63  ;;  %v3010_v26 = vrot.slane %v2349_v51, 3  ;;  %v274_v15 = vrot.slane %v2399_v14, 3 }
 0x10f   : > { %2996 = vst [vmem:[#allocation11_spill] sm:$0xff] %v2389_v32  ;;  %1020 = vrot.lane.b32.xlu1 %v1005_v24, %s1503_s21  ;;  %v2407_v32 = vmul.f32 0.018659515, %v2998_v31  ;;  %3002 = vst [vmem:[#allocation9_spill] sm:$0xff] %v2417_v56  ;;  %v2420_v24 = vmul.f32 0.009963972, %v2987_v46  ;;  %v203_v8 = vadd.f32 %v185_v13, %v2417_v56 }
 0x110   : > { %1018 = vrot.lane.b32.xlu0 %v1006_v5, %s1503_s21  ;;  %3005 = vst [vmem:[#allocation63_spill] sm:$0xff] %v2428_v40  ;;  %3006 = vst [vmem:[#allocation64_spill] sm:$0xff] %v2431_v55  ;;  %v278_v38 = vsel %vm272_vm2, %v276_v27, %v3010_v26  ;;  %v189_v57 = vrot.slane %v2410_v62, 1  ;;  %v204_v27 = vadd.f32 %v184_v63, %v2428_v40  ;;  %v2466_v26 = vmul.f32 0.012189843, %v3000_v44  ;;  %v3021_v40 = vld [vmem:[#allocation31_spill] sm:$0xff] }
 0x111   : > { %2999 = vst [vmem:[#allocation18_spill] sm:$0xff] %v2407_v32  ;;  %v2422_v5 = vpop.permute.xlu1 %720  ;;  %v190_v58 = vrot.slane %v2407_v32, 1  ;;  %v210_v62 = vadd.f32 %v193_v35, %v2431_v55  ;;  %v283_v56 = vrot.slane %v2438_v45, 3  ;;  %v3017_v63 = vrot.slane %v1626_v7, 4 }
 0x112   : > { %3003 = vst [vmem:[#allocation10_spill] sm:$0xff] %v2422_v5  ;;  %v2424_v1 = vpop.permute.xlu0 %718  ;;  %v194_v5 = vsel %vm182_vm0, %v192_v53, %v193_v35  ;;  %v273_v53 = vrot.slane %v2420_v24, 3  ;;  %3015 = vst [vmem:[#allocation72_spill] sm:$0xff] %v2466_v26  ;;  %v3018_v35 = vld [vmem:[#allocation28_spill] sm:$0xff]  ;;  %v301_v7 = vmul.f32 0.0034758602, %v2987_v46 }
 0x113   : > { %3004 = vst [vmem:[#allocation62_spill] sm:$0xff] %v2424_v1  ;;  %v2442_v1 = vmul.f32 0.009963972, %v2990_v60  ;;  %1024 = vrot.lane.b32.xlu1 %v1008_v17, %s1503_s21  ;;  %v2458_v17 = vmul.f32 0.012189843, %v2998_v31  ;;  %v209_v13 = vadd.f32 %v194_v5, %v2434_v49  ;;  %v250_v55 = vadd.f32 %v3018_v35, %v205_v2  ;;  %v3023_v35 = vld [vmem:[#allocation30_spill] sm:$0xff] }
 0x114   : > { %1022 = vrot.lane.b32.xlu0 %v1009_v19, %s1503_s21  ;;  %v2485_v5 = vmul.f32 0.009963972, %v2998_v31  ;;  %v191_v12 = vsel %vm182_vm0, %v189_v57, %v190_v58  ;;  %v2489_v49 = vmul.f32 0.009963972, %v3000_v44  ;;  %v255_v23 = vadd.f32 %v3024_v59, %v210_v62  ;;  %v3029_v59 = vld [vmem:[#allocation25_spill] sm:$0xff] }
 0x115   : > { %3009 = vst [vmem:[#allocation67_spill] sm:$0xff] %v2442_v1  ;;  %3012 = vst [vmem:[#allocation69_spill] sm:$0xff] %v2458_v17  ;;  %v2460_v19 = vpop.permute.xlu1 %724  ;;  %v282_v32 = vrot.slane %v2442_v1, 3  ;;  %v275_v1 = vsel %vm272_vm2, %v273_v53, %v274_v15  ;;  %v208_v57 = vadd.f32 %v190_v58, %v2458_v17  ;;  %v207_v53 = vadd.f32 %v191_v12, %v2466_v26 }
 0x116   : > { %3013 = vst [vmem:[#allocation70_spill] sm:$0xff] %v2460_v19  ;;  %v2462_v9 = vpop.permute.xlu0 %722  ;;  %v2476_v19 = vmul.f32 0.0034758602, %v2990_v60  ;;  %3019 = vst [vmem:[#allocation74_spill] sm:$0xff] %v2485_v5  ;;  %v248_v60 = vadd.f32 %v3021_v40, %v203_v8  ;;  %v254_v8 = vadd.f32 %v3025_v50, %v209_v13  ;;  %v328_v46 = vrot.slane %v2472_v52, 4 }
 0x117   : > { %3014 = vst [vmem:[#allocation71_spill] sm:$0xff] %v2462_v9  ;;  %1056 = vrot.lane.b32.xlu1 %v3017_v63, %s1503_s21  ;;  %3020 = vst [vmem:[#allocation75_spill] sm:$0xff] %v2489_v49  ;;  %v3022_v63 = vrot.slane %v2338_v4, 1  ;;  %v249_v9 = vadd.f32 %v3023_v35, %v204_v27  ;;  %v284_v40 = vsel %vm272_vm2, %v282_v32, %v283_v56  ;;  %v280_v58 = vrot.slane %v2485_v5, 3 }
 0x118   : > { %3016 = vst [vmem:[#allocation73_spill] sm:$0xff] %v2476_v19  ;;  %1054 = vrot.lane.b32.xlu0 %v2083_v29, %s1503_s21  ;;  %v2516_v62 = vmul.f32 0.0034758602, %v2998_v31  ;;  %v279_v27 = vrot.slane %v2489_v49, 3  ;;  %v2520_v13 = vmul.f32 0.0034758602, %v3000_v44  ;;  %v295_v32 = vadd.f32 %v278_v38, %v250_v55 }
 0x119   : > { %v206_v29 = vadd.f32 %v3022_v63, %v2455_v61  ;;  %v2497_v45 = vpop.permute.xlu1 %772  ;;  %v327_v63 = vrot.slane %v2476_v19, 4  ;;  %v3026_v61 = vrot.slane %v1623_v6, 4  ;;  %v3027_v12 = vrot.slane %v2352_v47, 4  ;;  %v3030_v49 = vld [vmem:[#allocation35_spill] sm:$0xff]  ;;  %v3031_v38 = vld [vmem:[#allocation38_spill] sm:$0xff] }
 0x11a   : > { %v2499_v2 = vpop.permute.xlu0 %770  ;;  %v3028_v26 = vrot.slane %v2378_v42, 4  ;;  %v293_v31 = vadd.f32 %v275_v1, %v248_v60  ;;  %v300_v35 = vadd.f32 %v283_v56, %v255_v23  ;;  %v299_v44 = vadd.f32 %v284_v40, %v254_v8 }
 0x11b   : > { %1060 = vrot.lane.b32.xlu1 %v3026_v61, %s1503_s21  ;;  %v319_v61 = vrot.slane %v2414_v30, 4  ;;  %v251_v4 = vadd.f32 %v3029_v59, %v206_v29  ;;  %v253_v55 = vadd.f32 %v3030_v49, %v208_v57  ;;  %v252_v5 = vadd.f32 %v3031_v38, %v207_v53 }
 0x11c   : > { %1058 = vrot.lane.b32.xlu0 %v2095_v3, %s1503_s21  ;;  %v323_v6 = vsel %vm317_vm3, %v3028_v26, %v3027_v12  ;;  %v318_v3 = vrot.slane %v301_v7, 4  ;;  %v329_v19 = vsel %vm317_vm3, %v327_v63, %v328_v46  ;;  %v3032_v26 = vrot.slane %v1637_v10, 4 }
 0x11d   : > { %v2528_v17 = vpop.permute.xlu1 %776  ;;  %v294_v12 = vadd.f32 %v274_v15, %v249_v9  ;;  %v325_v1 = vrot.slane %v2516_v62, 4  ;;  %v281_v60 = vsel %vm272_vm2, %v279_v27, %v280_v58  ;;  %v324_v40 = vrot.slane %v2520_v13, 4 }
 0x11e   : > { %v2530_v50 = vpop.permute.xlu0 %774  ;;  %v320_v23 = vsel %vm317_vm3, %v318_v3, %v319_v61  ;;  %v3033_v57 = vrot.slane %v2349_v51, 3  ;;  %v345_v8 = vadd.f32 %v328_v46, %v300_v35  ;;  %v344_v53 = vadd.f32 %v329_v19, %v299_v44 }
 0x11f   : > { %1064 = vrot.lane.b32.xlu1 %v3032_v26, %s1503_s21  ;;  %v340_v63 = vadd.f32 %v323_v6, %v295_v32  ;;  %v297_v15 = vadd.f32 %v281_v60, %v252_v5  ;;  %v3034_v9 = vrot.slane %v1657_v16, 4  ;;  %v338_v27 = vadd.f32 %v320_v23, %v293_v31  ;;  %v3040_v60 = vld [vmem:[#allocation42_spill] sm:$0xff] }
 0x120   : > { %1062 = vrot.lane.b32.xlu0 %v2107_v11, %s1503_s21  ;;  %v296_v10 = vadd.f32 %v3033_v57, %v251_v4  ;;  %v298_v11 = vadd.f32 %v280_v58, %v253_v55  ;;  %v339_v3 = vadd.f32 %v319_v61, %v294_v12  ;;  %v326_v26 = vsel %vm317_vm3, %v324_v40, %v325_v1  ;;  %v3038_v12 = vld [vmem:[#allocation39_spill] sm:$0xff]  ;;  %v3042_v57 = vld [vmem:[#allocation32_spill] sm:$0xff] }
 0x121   : > { %v2545_v56 = vpop.permute.xlu1 %780  ;;  %v3035_v4 = vrot.slane %v2352_v47, 4  ;;  %v393_v35 = vadd.f32 %v2156_v20, %v345_v8  ;;  %v392_v5 = vadd.f32 %v2158_v43, %v344_v53  ;;  %v388_v16 = vadd.f32 %v2129_v33, %v340_v63  ;;  %v3041_v40 = vld [vmem:[#allocation43_spill] sm:$0xff]  ;;  %v3043_v8 = vld [vmem:[#allocation33_spill] sm:$0xff]  ;;  %v3044_v63 = vld [vmem:[#allocation60_spill] sm:$0xff] }
 0x122   : > { %v2547_v29 = vpop.permute.xlu0 %778  ;;  %v343_v46 = vadd.f32 %v325_v1, %v298_v11  ;;  %v342_v58 = vadd.f32 %v326_v26, %v297_v15  ;;  %v387_v32 = vadd.f32 %v2140_v36, %v339_v3  ;;  %v1119_v33 = vrot.slane %v2399_v14, 1  ;;  %v3039_v1 = vld [vmem:[#allocation53_spill] sm:$0xff]  ;;  %v3047_v26 = vld [vmem:[#allocation48_spill] sm:$0xff] }
 0x123   : > { %1068 = vrot.lane.b32.xlu1 %v3034_v9, %s1503_s21  ;;  %v341_v19 = vadd.f32 %v3035_v4, %v296_v10  ;;  %v453_v6 = vadd.f32 %v2192_v54, %v393_v35  ;;  %v452_v20 = vadd.f32 %v2194_v25, %v392_v5  ;;  %v1118_v31 = vrot.slane %v2420_v24, 1  ;;  %v3037_v24 = vld [vmem:[#allocation47_spill] sm:$0xff]  ;;  %v3045_v15 = vld [vmem:[#allocation61_spill] sm:$0xff]  ;;  %v3049_v5 = vld [vmem:[#allocation54_spill] sm:$0xff] }
 0x124   : > { %1066 = vrot.lane.b32.xlu0 %v2117_v28, %s1503_s21  ;;  %v386_v28 = vadd.f32 %v2131_v0, %v338_v27  ;;  %v447_v0 = vadd.f32 %v2165_v22, %v387_v32  ;;  %v391_v55 = vadd.f32 %v2147_v37, %v343_v46  ;;  %v390_v14 = vadd.f32 %v2149_v39, %v342_v58  ;;  %v3046_v27 = vld [vmem:[#allocation44_spill] sm:$0xff]  ;;  %v3050_v46 = vld [vmem:[#allocation55_spill] sm:$0xff] }
 0x125   : > { %v2557_v38 = vpop.permute.xlu1 %784  ;;  %v513_v54 = vadd.f32 %v2228_v34, %v453_v6  ;;  %v512_v25 = vadd.f32 %v2230_v21, %v452_v20  ;;  %v389_v44 = vadd.f32 %v2138_v48, %v341_v19  ;;  %v448_v37 = vadd.f32 %v3041_v40, %v388_v16  ;;  %v3048_v19 = vld [vmem:[#allocation49_spill] sm:$0xff]  ;;  %v3062_v40 = vld [vmem:[#allocation56_spill] sm:$0xff] }
 0x126   : > { %v2559_v49 = vpop.permute.xlu0 %782  ;;  %v446_v36 = vadd.f32 %v2167_v18, %v386_v28  ;;  %v451_v3 = vadd.f32 %v3046_v27, %v391_v55  ;;  %v3051_v28 = vld [vmem:[#allocation12_spill] sm:$0xff]  ;;  %v3052_v6 = vld [vmem:[#allocation13_spill] sm:$0xff] }
 0x127   : > { %1088 = vrot.lane.b32.xlu1 %v2414_v30, %s1504_s22  ;;  %v1122_v30 = vrot.slane %v2349_v51, 1  ;;  %v573_v34 = vadd.f32 %v3038_v12, %v513_v54  ;;  %v572_v21 = vadd.f32 %v3039_v1, %v512_v25  ;;  %v449_v48 = vadd.f32 %v3040_v60, %v389_v44  ;;  %v3055_v54 = vld [vmem:[#allocation34_spill] sm:$0xff]  ;;  %v3056_v44 = vld [vmem:[#allocation36_spill] sm:$0xff]  ;;  %v3060_v1 = vld [vmem:[#allocation71_spill] sm:$0xff] }
 0x128   : > { %1086 = vrot.lane.b32.xlu0 %v301_v7, %s1504_s22  ;;  %v1121_v7 = vrot.slane %v2359_v41, 1  ;;  %v3036_v41 = vld [vmem:[#allocation46_spill] sm:$0xff]  ;;  %v506_v18 = vadd.f32 %v3037_v24, %v446_v36  ;;  %v508_v35 = vadd.f32 %v3048_v19, %v448_v37  ;;  %v3061_v60 = vld [vmem:[#allocation51_spill] sm:$0xff]  ;;  %v3063_v37 = vld [vmem:[#allocation57_spill] sm:$0xff] }
 0x129   : > { %v2573_v61 = vpop.permute.xlu1 %816  ;;  %v507_v22 = vadd.f32 %v3036_v41, %v447_v0  ;;  %v633_v11 = vadd.f32 %v3044_v63, %v573_v34  ;;  %v632_v9 = vadd.f32 %v3045_v15, %v572_v21  ;;  %v509_v4 = vadd.f32 %v3047_v26, %v449_v48  ;;  %v3054_v0 = vld [vmem:[#allocation50_spill] sm:$0xff] }
 0x12a   : > { %v2575_v43 = vpop.permute.xlu0 %814  ;;  %v566_v53 = vadd.f32 %v3043_v8, %v506_v18  ;;  %v511_v36 = vadd.f32 %v3054_v0, %v451_v3  ;;  %v568_v55 = vadd.f32 %v3056_v44, %v508_v35  ;;  %v3058_v24 = vld [vmem:[#allocation22_spill] sm:$0xff]  ;;  %v3067_v3 = vld [vmem:[#allocation52_spill] sm:$0xff]  ;;  %v3074_v0 = vld [vmem:[#allocation75_spill] sm:$0xff] }
 0x12b   : > { %1092 = vrot.lane.b32.xlu1 %v2352_v47, %s1504_s22  ;;  %v1120_v47 = vsel %vm182_vm0, %v1118_v31, %v1119_v33  ;;  %v567_v10 = vadd.f32 %v3042_v57, %v507_v22  ;;  %v681_v32 = vadd.f32 %v3051_v28, %v633_v11  ;;  %v680_v20 = vadd.f32 %v3052_v6, %v632_v9  ;;  %v3053_v31 = vld [vmem:[#allocation45_spill] sm:$0xff]  ;;  %v3057_v22 = vld [vmem:[#allocation20_spill] sm:$0xff]  ;;  %v3059_v12 = vld [vmem:[#allocation70_spill] sm:$0xff] }
 0x12c   : > { %1090 = vrot.lane.b32.xlu0 %v2378_v42, %s1504_s22  ;;  %v1123_v42 = vsel %vm182_vm0, %v1121_v7, %v1122_v30  ;;  %v626_v58 = vadd.f32 %v3050_v46, %v566_v53  ;;  %v450_v7 = vadd.f32 %v3053_v31, %v390_v14  ;;  %v569_v25 = vadd.f32 %v3055_v54, %v509_v4  ;;  %v3065_v53 = vld [vmem:[#allocation15_spill] sm:$0xff]  ;;  %v3066_v9 = vld [vmem:[#allocation37_spill] sm:$0xff]  ;;  %v3069_v35 = vld [vmem:[#allocation24_spill] sm:$0xff] }
 0x12d   : > { %v2598_v23 = vpop.permute.xlu1 %820  ;;  %v627_v16 = vadd.f32 %v3049_v5, %v567_v10  ;;  %v741_v34 = vadd.f32 %v3059_v12, %v681_v32  ;;  %v740_v21 = vadd.f32 %v3060_v1, %v680_v20  ;;  %v628_v57 = vadd.f32 %v3063_v37, %v568_v55  ;;  %v3064_v10 = vld [vmem:[#allocation14_spill] sm:$0xff]  ;;  %v3068_v4 = vld [vmem:[#allocation21_spill] sm:$0xff]  ;;  %v3071_v6 = vld [vmem:[#allocation59_spill] sm:$0xff] }
 0x12e   : > { %v2600_v39 = vpop.permute.xlu0 %818  ;;  %v674_v18 = vadd.f32 %v3058_v24, %v626_v58  ;;  %v510_v48 = vadd.f32 %v3061_v60, %v450_v7  ;;  %v629_v14 = vadd.f32 %v3062_v40, %v569_v25  ;;  %v571_v27 = vadd.f32 %v3066_v9, %v511_v36  ;;  %v3070_v32 = vld [vmem:[#allocation58_spill] sm:$0xff]  ;;  %v3072_v20 = vld [vmem:[#allocation73_spill] sm:$0xff]  ;;  %v3076_v25 = vld [vmem:[#allocation11_spill] sm:$0xff] }
 0x12f   : > { %1096 = vrot.lane.b32.xlu1 %v2516_v62, %s1504_s22  ;;  %v801_v11 = vadd.f32 %v2557_v38, %v741_v34  ;;  %v800_v15 = vadd.f32 %v2559_v49, %v740_v21  ;;  %v676_v5 = vadd.f32 %v3069_v35, %v628_v57  ;;  %v3073_v31 = vld [vmem:[#allocation74_spill] sm:$0xff]  ;;  %v1124_v36 = vrot.slane %v3074_v0, 1 }
 0x130   : > { %1094 = vrot.lane.b32.xlu0 %v2520_v13, %s1504_s22  ;;  %v675_v13 = vadd.f32 %v3057_v22, %v627_v16  ;;  %v734_v63 = vadd.f32 %v3065_v53, %v674_v18  ;;  %v570_v26 = vadd.f32 %v3067_v3, %v510_v48  ;;  %v677_v19 = vadd.f32 %v3068_v4, %v629_v14  ;;  %v3075_v54 = vld [vmem:[#allocation6_spill] sm:$0xff]  ;;  %v3077_v22 = vld [vmem:[#allocation23_spill] sm:$0xff] }
 0x131   : > { %v825_v62 = vpop.permute.xlu1 %824  ;;  %v631_v38 = vadd.f32 %v3070_v32, %v571_v27  ;;  %v1125_v7 = vrot.slane %v3073_v31, 1  ;;  %v3078_v24 = vld [vmem:[#allocation26_spill] sm:$0xff]  ;;  %v3088_v31 = vld [vmem:[#allocation35_spill] sm:$0xff] }
 0x132   : > { %v823_v41 = vpop.permute.xlu0 %822  ;;  %v735_v8 = vadd.f32 %v3064_v10, %v675_v13  ;;  %v794_v46 = vadd.f32 %v2499_v2, %v734_v63  ;;  %v630_v49 = vadd.f32 %v3071_v6, %v570_v26  ;;  %v736_v2 = vadd.f32 %v3076_v25, %v676_v5  ;;  %v3080_v40 = vld [vmem:[#allocation62_spill] sm:$0xff]  ;;  %v3090_v25 = vld [vmem:[#allocation27_spill] sm:$0xff] }
 0x133   : > { %1132 = vrot.lane.b32.xlu1 %v1119_v33, %s1504_s22  ;;  %v679_v13 = vadd.f32 %v3077_v22, %v631_v38  ;;  %v3081_v63 = vld [vmem:[#allocation66_spill] sm:$0xff]  ;;  %v3087_v38 = vld [vmem:[#allocation5_spill] sm:$0xff] }
 0x134   : > { %1130 = vrot.lane.b32.xlu0 %v1120_v47, %s1504_s22  ;;  %v795_v47 = vadd.f32 %v2497_v45, %v735_v8  ;;  %v737_v45 = vadd.f32 %v3075_v54, %v677_v19  ;;  %v838_v55 = vadd.f32 %v2575_v43, %v794_v46  ;;  %v678_v18 = vadd.f32 %v3078_v24, %v630_v49  ;;  %v3079_v43 = vld [vmem:[#allocation10_spill] sm:$0xff]  ;;  %v3086_v46 = vld [vmem:[#allocation7_spill] sm:$0xff] }
 0x135   : > { %v829_v16 = vpop.permute.xlu1 %828  ;;  %v796_v1 = vadd.f32 %v2530_v50, %v736_v2  ;;  %v739_v48 = vadd.f32 %v3079_v43, %v679_v13  ;;  %v1195_v32 = vrot.slane %v3086_v46, 3  ;;  %v1194_v6 = vrot.slane %v3087_v38, 3  ;;  %v3103_v46 = vld [vmem:[#allocation72_spill] sm:$0xff] }
 0x136   : > { %v827_v33 = vpop.permute.xlu0 %826  ;;  %v845_v58 = vadd.f32 %v829_v16, %v801_v11  ;;  %v839_v44 = vadd.f32 %v2573_v61, %v795_v47  ;;  %v797_v34 = vadd.f32 %v2528_v17, %v737_v45  ;;  %v1126_v61 = vsel %vm182_vm0, %v1124_v36, %v1125_v7  ;;  %v3085_v47 = vld [vmem:[#allocation28_spill] sm:$0xff] }
 0x137   : > { %v844_v28 = vadd.f32 %v827_v33, %v800_v15  ;;  %1100 = vrot.lane.b32.xlu1 %v2472_v52, %s1504_s22  ;;  %v738_v14 = vadd.f32 %v3080_v40, %v678_v18  ;;  %v840_v17 = vadd.f32 %v2600_v39, %v796_v1  ;;  %v799_v10 = vadd.f32 %v2545_v56, %v739_v48  ;;  %v3082_v15 = vld [vmem:[#allocation67_spill] sm:$0xff]  ;;  %v3083_v56 = vld [vmem:[#allocation30_spill] sm:$0xff] }
 0x138   : > { %1098 = vrot.lane.b32.xlu0 %v3072_v20, %s1504_s22  ;;  %v841_v37 = vadd.f32 %v2598_v23, %v797_v34  ;;  %v1128_v11 = vrot.slane %v3081_v63, 1  ;;  %v1127_v23 = vrot.slane %v3082_v15, 1  ;;  %v1196_v0 = vsel %vm272_vm2, %v1194_v6, %v1195_v32  ;;  %v3094_v1 = vld [vmem:[#allocation18_spill] sm:$0xff]  ;;  %v3098_v63 = vld [vmem:[#allocation16_spill] sm:$0xff]  ;;  %v3099_v15 = vld [vmem:[#allocation17_spill] sm:$0xff] }
 0x139   : > { %v861_v52 = vpop.permute.xlu1 %860  ;;  %v798_v8 = vadd.f32 %v2547_v29, %v738_v14  ;;  %v3084_v29 = vld [vmem:[#allocation31_spill] sm:$0xff]  ;;  %v1198_v2 = vrot.slane %v3090_v25, 3 }
 0x13a   : > { %v859_v12 = vpop.permute.xlu0 %858  ;;  %v883_v21 = vadd.f32 %v861_v52, %v839_v44  ;;  %v1129_v26 = vsel %vm182_vm0, %v1127_v23, %v1128_v11  ;;  %v3091_v44 = vld [vmem:[#allocation29_spill] sm:$0xff]  ;;  %v3092_v52 = vld [vmem:[#allocation40_spill] sm:$0xff]  ;;  %v1203_v23 = vrot.slane %v3099_v15, 3 }
 0x13b   : > { %v882_v60 = vadd.f32 %v859_v12, %v838_v55  ;;  %1136 = vrot.lane.b32.xlu1 %v1122_v30, %s1504_s22  ;;  %v842_v53 = vadd.f32 %v823_v41, %v798_v8  ;;  %v1197_v55 = vrot.slane %v3091_v44, 3  ;;  %v3093_v12 = vld [vmem:[#allocation41_spill] sm:$0xff] }
 0x13c   : > { %1134 = vrot.lane.b32.xlu0 %v1123_v42, %s1504_s22  ;;  %v843_v42 = vadd.f32 %v825_v62, %v799_v10 }
 0x13d   : > { %v865_v57 = vpop.permute.xlu1 %864  ;;  %v1199_v34 = vsel %vm272_vm2, %v1197_v55, %v1198_v2 }
 0x13e   : > { %v863_v50 = vpop.permute.xlu0 %862  ;;  %v885_v51 = vadd.f32 %v865_v57, %v841_v37 }
 0x13f   : > { %v884_v30 = vadd.f32 %v863_v50, %v840_v17  ;;  %1140 = vrot.lane.b32.xlu1 %v1125_v7, %s1504_s22  ;;  %v3089_v7 = vld [vmem:[#allocation38_spill] sm:$0xff]  ;;  %v3096_v17 = vld [vmem:[#allocation63_spill] sm:$0xff]  ;;  %v3097_v50 = vld [vmem:[#allocation9_spill] sm:$0xff] }
 0x140   : > { %1138 = vrot.lane.b32.xlu0 %v1126_v61, %s1504_s22  ;;  %v1247_v57 = vrot.slane %v3096_v17, 4  ;;  %v1246_v10 = vrot.slane %v3097_v50, 4 }
 0x141   : > { %v869_v9 = vpop.permute.xlu1 %868 }
 0x142   : > { %v867_v39 = vpop.permute.xlu0 %866  ;;  %v887_v27 = vadd.f32 %v869_v9, %v843_v42 }
 0x143   : > { %v886_v3 = vadd.f32 %v867_v39, %v842_v53  ;;  %1164 = vrot.lane.b32.xlu1 %v3083_v56, %s1504_s22  ;;  %v1248_v53 = vsel %vm317_vm3, %v1246_v10, %v1247_v57 }
 0x144   : > { %1162 = vrot.lane.b32.xlu0 %v3084_v29, %s1504_s22  ;;  %v3100_v29 = vld [vmem:[#allocation68_spill] sm:$0xff] }
 0x145   : > { %v873_v4 = vpop.permute.xlu1 %872 }
 0x146   : > { %v871_v19 = vpop.permute.xlu0 %870  ;;  %v889_v62 = vadd.f32 %v873_v4, %v845_v58  ;;  %v3101_v4 = vld [vmem:[#allocation8_spill] sm:$0xff] }
 0x147   : > { %v888_v41 = vadd.f32 %v871_v19, %v844_v28  ;;  %1144 = vrot.lane.b32.xlu1 %v1128_v11, %s1504_s22  ;;  %v1204_v11 = vrot.slane %v3098_v63, 3  ;;  %v1249_v19 = vrot.slane %v3101_v4, 4 }
 0x148   : > { %1142 = vrot.lane.b32.xlu0 %v1129_v26, %s1504_s22  ;;  %v1250_v26 = vrot.slane %v3100_v29, 4 }
 0x149   : > { %v893_v35 = vpop.permute.xlu1 %892  ;;  %v1205_v56 = vsel %vm272_vm2, %v1203_v23, %v1204_v11 }
 0x14a   : > { %v891_v5 = vpop.permute.xlu0 %890  ;;  %v915_v16 = vadd.f32 %v893_v35, %v883_v21  ;;  %v1201_v21 = vrot.slane %v3094_v1, 3 }
 0x14b   : > { %v914_v33 = vadd.f32 %v891_v5, %v882_v60  ;;  %1168 = vrot.lane.b32.xlu1 %v3029_v59, %s1504_s22  ;;  %v3095_v60 = vld [vmem:[#allocation19_spill] sm:$0xff] }
 0x14c   : > { %1166 = vrot.lane.b32.xlu0 %v3085_v47, %s1504_s22  ;;  %v1200_v61 = vrot.slane %v3095_v60, 3 }
 0x14d   : > { %v897_v58 = vpop.permute.xlu1 %896 }
 0x14e   : > { %v895_v28 = vpop.permute.xlu0 %894  ;;  %v917_v49 = vadd.f32 %v897_v58, %v885_v51  ;;  %v1202_v37 = vsel %vm272_vm2, %v1200_v61, %v1201_v21 }
 0x14f   : > { %v916_v20 = vadd.f32 %v895_v28, %v884_v30  ;;  %1172 = vrot.lane.b32.xlu1 %v3088_v31, %s1504_s22 }
 0x150   : > { %1170 = vrot.lane.b32.xlu0 %v3089_v7, %s1504_s22  ;;  %v3105_v7 = vld [vmem:[#allocation65_spill] sm:$0xff] }
 0x151   : > { %v901_v59 = vpop.permute.xlu1 %900 }
 0x152   : > { %v899_v36 = vpop.permute.xlu0 %898  ;;  %v919_v54 = vadd.f32 %v901_v59, %v887_v27 }
 0x153   : > { %v918_v45 = vadd.f32 %v899_v36, %v886_v3  ;;  %1208 = vrot.lane.b32.xlu1 %v1195_v32, %s1504_s22  ;;  %v1252_v32 = vrot.slane %v3103_v46, 4 }
 0x154   : > { %1206 = vrot.lane.b32.xlu0 %v1196_v0, %s1504_s22  ;;  %v1255_v0 = vrot.slane %v3105_v7, 4 }
 0x155   : > { %v905_v22 = vpop.permute.xlu1 %904 }
 0x156   : > { %v903_v13 = vpop.permute.xlu0 %902  ;;  %v921_v24 = vadd.f32 %v905_v22, %v889_v62 }
 0x157   : > { %v920_v18 = vadd.f32 %v903_v13, %v888_v41  ;;  %1176 = vrot.lane.b32.xlu1 %v3092_v52, %s1504_s22 }
 0x158   : > { %1174 = vrot.lane.b32.xlu0 %v3093_v12, %s1504_s22 }
 0x159   : > { %v937_v43 = vpop.permute.xlu1 %936 }
 0x15a   : > { %v935_v48 = vpop.permute.xlu0 %934  ;;  %v959_v40 = vadd.f32 %v937_v43, %v915_v16  ;;  %v1251_v16 = vsel %vm317_vm3, %v1249_v19, %v1250_v26 }
 0x15b   : > { %v958_v14 = vadd.f32 %v935_v48, %v914_v33  ;;  %1212 = vrot.lane.b32.xlu1 %v1198_v2, %s1504_s22  ;;  %v3102_v33 = vld [vmem:[#allocation69_spill] sm:$0xff] }
 0x15c   : > { %1210 = vrot.lane.b32.xlu0 %v1199_v34, %s1504_s22  ;;  %v1253_v47 = vrot.slane %v3102_v33, 4 }
 0x15d   : > { %v941_v8 = vpop.permute.xlu1 %940 }
 0x15e   : > { %v939_v51 = vpop.permute.xlu0 %938  ;;  %v961_v30 = vadd.f32 %v941_v8, %v917_v49  ;;  %v1254_v49 = vsel %vm317_vm3, %v1252_v32, %v1253_v47 }
 0x15f   : > { %v960_v42 = vadd.f32 %v939_v51, %v916_v20  ;;  %1216 = vrot.lane.b32.xlu1 %v1201_v21, %s1504_s22  ;;  %v3104_v20 = vld [vmem:[#allocation64_spill] sm:$0xff] }
 0x160   : > { %1214 = vrot.lane.b32.xlu0 %v1202_v37, %s1504_s22  ;;  %v1256_v31 = vrot.slane %v3104_v20, 4 }
 0x161   : > { %v945_v9 = vpop.permute.xlu1 %944 }
 0x162   : > { %v943_v39 = vpop.permute.xlu0 %942  ;;  %v963_v27 = vadd.f32 %v945_v9, %v919_v54  ;;  %v1257_v25 = vsel %vm317_vm3, %v1255_v0, %v1256_v31 }
 0x163   : > { %v962_v3 = vadd.f32 %v943_v39, %v918_v45  ;;  %1260 = vrot.lane.b32.xlu1 %v1247_v57, %s1504_s22 }
 0x164   : > { %1258 = vrot.lane.b32.xlu0 %v1248_v53, %s1504_s22 }
 0x165   : > { %v949_v62 = vpop.permute.xlu1 %948 }
 0x166   : > { %v947_v41 = vpop.permute.xlu0 %946  ;;  %v965_v35 = vadd.f32 %v949_v62, %v921_v24 }
 0x167   : > { %v964_v5 = vadd.f32 %v947_v41, %v920_v18  ;;  %1220 = vrot.lane.b32.xlu1 %v1204_v11, %s1504_s22 }
 0x168   : > { %1218 = vrot.lane.b32.xlu0 %v1205_v56, %s1504_s22 }
 0x169   : > { %v969_v38 = vpop.permute.xlu1 %968 }
 0x16a   : > { %v967_v6 = vpop.permute.xlu0 %966  ;;  %v991_v58 = vadd.f32 %v969_v38, %v959_v40 }
 0x16b   : > { %v990_v28 = vadd.f32 %v967_v6, %v958_v14  ;;  %1264 = vrot.lane.b32.xlu1 %v1250_v26, %s1504_s22 }
 0x16c   : > { %1262 = vrot.lane.b32.xlu0 %v1251_v16, %s1504_s22 }
 0x16d   : > { %v973_v59 = vpop.permute.xlu1 %972 }
 0x16e   : > { %v971_v36 = vpop.permute.xlu0 %970  ;;  %v993_v54 = vadd.f32 %v973_v59, %v961_v30 }
 0x16f   : > { %v992_v45 = vadd.f32 %v971_v36, %v960_v42  ;;  %1268 = vrot.lane.b32.xlu1 %v1253_v47, %s1504_s22 }
 0x170   : > { %1266 = vrot.lane.b32.xlu0 %v1254_v49, %s1504_s22 }
 0x171   : > { %v977_v2 = vpop.permute.xlu1 %976 }
 0x172   : > { %v975_v44 = vpop.permute.xlu0 %974  ;;  %v995_v55 = vadd.f32 %v977_v2, %v963_v27 }
 0x173   : > { %v994_v22 = vadd.f32 %v975_v44, %v962_v3  ;;  %1272 = vrot.lane.b32.xlu1 %v1256_v31, %s1504_s22 }
 0x174   : > { %1270 = vrot.lane.b32.xlu0 %v1257_v25, %s1504_s22 }
 0x175   : > { %v981_v13 = vpop.permute.xlu1 %980 }
 0x176   : > { %v979_v24 = vpop.permute.xlu0 %978  ;;  %v997_v18 = vadd.f32 %v981_v13, %v965_v35 }
 0x177   : > { %v996_v52 = vadd.f32 %v979_v24, %v964_v5 }
 0x179   : > { %v1013_v12 = vpop.permute.xlu1 %1012 }
 0x17a   : > { %v1011_v34 = vpop.permute.xlu0 %1010  ;;  %v1035_v1 = vadd.f32 %v1013_v12, %v991_v58 }
 0x17b   : > { %v1034_v21 = vadd.f32 %v1011_v34, %v990_v28 }
 0x17d   : > { %v1017_v60 = vpop.permute.xlu1 %1016 }
 0x17e   : > { %v1015_v61 = vpop.permute.xlu0 %1014  ;;  %v1037_v43 = vadd.f32 %v1017_v60, %v993_v54 }
 0x17f   : > { %v1036_v48 = vadd.f32 %v1015_v61, %v992_v45 }
 0x181   : > { %v1021_v40 = vpop.permute.xlu1 %1020 }
 0x182   : > { %v1019_v14 = vpop.permute.xlu0 %1018  ;;  %v1039_v37 = vadd.f32 %v1021_v40, %v995_v55 }
 0x183   : > { %v1038_v17 = vadd.f32 %v1019_v14, %v994_v22 }
 0x185   : > { %v1025_v57 = vpop.permute.xlu1 %1024 }
 0x186   : > { %v1023_v50 = vpop.permute.xlu0 %1022  ;;  %v1041_v10 = vadd.f32 %v1025_v57, %v997_v18 }
 0x187   : > { %v1040_v8 = vadd.f32 %v1023_v50, %v996_v52 }
 0x189   : > { %v1057_v51 = vpop.permute.xlu1 %1056 }
 0x18a   : > { %v1055_v30 = vpop.permute.xlu0 %1054  ;;  %v1079_v42 = vadd.f32 %v1057_v51, %v1035_v1 }
 0x18b   : > { %v1078_v53 = vadd.f32 %v1055_v30, %v1034_v21 }
 0x18d   : > { %v1061_v63 = vpop.permute.xlu1 %1060 }
 0x18e   : > { %v1059_v11 = vpop.permute.xlu0 %1058  ;;  %v1081_v15 = vadd.f32 %v1061_v63, %v1037_v43 }
 0x18f   : > { %v1080_v23 = vadd.f32 %v1059_v11, %v1036_v48 }
 0x191   : > { %v1065_v9 = vpop.permute.xlu1 %1064 }
 0x192   : > { %v1063_v39 = vpop.permute.xlu0 %1062  ;;  %v2734_v27 = vadd.f32 %v1065_v9, %v1039_v37 }
 0x193   : > { %v2736_v3 = vadd.f32 %v1063_v39, %v1038_v17 }
 0x195   : > { %v1069_v56 = vpop.permute.xlu1 %1068 }
 0x196   : > { %v1067_v29 = vpop.permute.xlu0 %1066  ;;  %v2738_v26 = vadd.f32 %v1069_v56, %v1041_v10 }
 0x197   : > { %v2740_v4 = vadd.f32 %v1067_v29, %v1040_v8 }
 0x199   : > { %v1089_v19 = vpop.permute.xlu1 %1088 }
 0x19a   : > { %v1087_v62 = vpop.permute.xlu0 %1086  ;;  %v1111_v13 = vadd.f32 %v1089_v19, %v1079_v42 }
 0x19b   : > { %v1110_v24 = vadd.f32 %v1087_v62, %v1078_v53 }
 0x19d   : > { %v1093_v41 = vpop.permute.xlu1 %1092 }
 0x19e   : > { %v1091_v35 = vpop.permute.xlu0 %1090  ;;  %v1113_v40 = vadd.f32 %v1093_v41, %v1081_v15 }
 0x19f   : > { %v1112_v14 = vadd.f32 %v1091_v35, %v1080_v23 }
 0x1a1   : > { %v1097_v5 = vpop.permute.xlu1 %1096 }
 0x1a2   : > { %v1095_v16 = vpop.permute.xlu0 %1094  ;;  %v1115_v51 = vadd.f32 %v1097_v5, %v2734_v27 }
 0x1a3   : > { %v1114_v30 = vadd.f32 %v1095_v16, %v2736_v3 }
 0x1a5   : > { %v1133_v33 = vpop.permute.xlu1 %1132 }
 0x1a6   : > { %v1131_v47 = vpop.permute.xlu0 %1130  ;;  %v1155_v18 = vadd.f32 %v1133_v33, %v1111_v13 }
 0x1a7   : > { %v1154_v52 = vadd.f32 %v1131_v47, %v1110_v24 }
 0x1a9   : > { %v1101_v46 = vpop.permute.xlu1 %1100 }
 0x1aa   : > { %v1099_v32 = vpop.permute.xlu0 %1098  ;;  %v1117_v9 = vadd.f32 %v1101_v46, %v2738_v26 }
 0x1ab   : > { %v1116_v39 = vadd.f32 %v1099_v32, %v2740_v4 }
 0x1ad   : > { %v1137_v38 = vpop.permute.xlu1 %1136 }
 0x1ae   : > { %v1135_v6 = vpop.permute.xlu0 %1134  ;;  %v1157_v57 = vadd.f32 %v1137_v38, %v1113_v40 }
 0x1af   : > { %v1156_v50 = vadd.f32 %v1135_v6, %v1112_v14 }
 0x1b1   : > { %v1141_v58 = vpop.permute.xlu1 %1140 }
 0x1b2   : > { %v1139_v28 = vpop.permute.xlu0 %1138  ;;  %v1159_v63 = vadd.f32 %v1141_v58, %v1115_v51 }
 0x1b3   : > { %v1158_v11 = vadd.f32 %v1139_v28, %v1114_v30 }
 0x1b5   : > { %v1165_v49 = vpop.permute.xlu1 %1164 }
 0x1b6   : > { %v1163_v20 = vpop.permute.xlu0 %1162  ;;  %v1187_v1 = vadd.f32 %v1165_v49, %v1155_v18 }
 0x1b7   : > { %v1186_v21 = vadd.f32 %v1163_v20, %v1154_v52 }
 0x1b9   : > { %v1145_v31 = vpop.permute.xlu1 %1144 }
 0x1ba   : > { %v1143_v7 = vpop.permute.xlu0 %1142  ;;  %v1161_v3 = vadd.f32 %v1145_v31, %v1117_v9 }
 0x1bb   : > { %v1160_v35 = vadd.f32 %v1143_v7, %v1116_v39 }
 0x1bd   : > { %v1169_v0 = vpop.permute.xlu1 %1168 }
 0x1be   : > { %v1167_v59 = vpop.permute.xlu0 %1166  ;;  %v1189_v42 = vadd.f32 %v1169_v0, %v1157_v57 }
 0x1bf   : > { %v1188_v53 = vadd.f32 %v1167_v59, %v1156_v50 }
 0x1c1   : > { %v1173_v36 = vpop.permute.xlu1 %1172 }
 0x1c2   : > { %v1171_v54 = vpop.permute.xlu0 %1170  ;;  %v1191_v19 = vadd.f32 %v1173_v36, %v1159_v63 }
 0x1c3   : > { %v1190_v62 = vadd.f32 %v1171_v54, %v1158_v11 }
 0x1c5   : > { %v1209_v45 = vpop.permute.xlu1 %1208 }
 0x1c6   : > { %v1207_v25 = vpop.permute.xlu0 %1206  ;;  %v1231_v60 = vadd.f32 %v1209_v45, %v1187_v1 }
 0x1c7   : > { %v1230_v61 = vadd.f32 %v1207_v25, %v1186_v21 }
 0x1c9   : > { %v1177_v2 = vpop.permute.xlu1 %1176 }
 0x1ca   : > { %v1175_v44 = vpop.permute.xlu0 %1174  ;;  %v1193_v33 = vadd.f32 %v1177_v2, %v1161_v3 }
 0x1cb   : > { %v1192_v47 = vadd.f32 %v1175_v44, %v1160_v35 }
 0x1cd   : > { %v1213_v55 = vpop.permute.xlu1 %1212 }
 0x1ce   : > { %v1211_v22 = vpop.permute.xlu0 %1210  ;;  %v1233_v15 = vadd.f32 %v1213_v55, %v1189_v42 }
 0x1cf   : > { %v1232_v23 = vadd.f32 %v1211_v22, %v1188_v53 }
 0x1d1   : > { %v1217_v12 = vpop.permute.xlu1 %1216 }
 0x1d2   : > { %v1215_v34 = vpop.permute.xlu0 %1214  ;;  %v1235_v5 = vadd.f32 %v1217_v12, %v1191_v19 }
 0x1d3   : > { %v1234_v16 = vadd.f32 %v1215_v34, %v1190_v62 }
 0x1d5   : > { %v1261_v43 = vpop.permute.xlu1 %1260 }
 0x1d6   : > { %v1259_v48 = vpop.permute.xlu0 %1258  ;;  %v1283_v37 = vadd.f32 %v1261_v43, %v1231_v60 }
 0x1d7   : > { %v1282_v17 = vadd.f32 %v1259_v48, %v1230_v61 }
 0x1d8   : > { %1293 = vst.msk [vmem:[%s2747_s10 + $0x8] sm:$0xf] %vm1292_vm4, %v1283_v37 }
 0x1d9   : > { %1291 = vst.msk [vmem:[%s2747_s10] sm:$0xff] %vm1290_vm5, %v1282_v17  ;;  %v1221_v10 = vpop.permute.xlu1 %1220 }
 0x1da   : > { %v1219_v8 = vpop.permute.xlu0 %1218  ;;  %v1237_v38 = vadd.f32 %v1221_v10, %v1193_v33 }
 0x1db   : > { %v1236_v6 = vadd.f32 %v1219_v8, %v1192_v47 }
 0x1dd   : > { %v1265_v56 = vpop.permute.xlu1 %1264 }
 0x1de   : > { %v1263_v29 = vpop.permute.xlu0 %1262  ;;  %v1285_v41 = vadd.f32 %v1265_v56, %v1233_v15 }
 0x1df   : > { %v1284_v27 = vadd.f32 %v1263_v29, %v1232_v23 }
 0x1e0   : > { %1295 = vst.msk [vmem:[%s2747_s10 + $0x18] sm:$0xf] %vm1292_vm4, %v1285_v41 }
 0x1e1   : > { %1294 = vst.msk [vmem:[%s2747_s10 + $0x10] sm:$0xff] %vm1290_vm5, %v1284_v27  ;;  %v1269_v26 = vpop.permute.xlu1 %1268 }
 0x1e2   : > { %v1267_v4 = vpop.permute.xlu0 %1266  ;;  %v1287_v46 = vadd.f32 %v1269_v26, %v1235_v5 }
 0x1e3   : > { %v1286_v32 = vadd.f32 %v1267_v4, %v1234_v16 }
 0x1e4   : > { %1297 = vst.msk [vmem:[%s2747_s10 + $0x28] sm:$0xf] %vm1292_vm4, %v1287_v46 }
 0x1e5   : > { %1296 = vst.msk [vmem:[%s2747_s10 + $0x20] sm:$0xff] %vm1290_vm5, %v1286_v32  ;;  %v1273_v58 = vpop.permute.xlu1 %1272 }
 0x1e6   : > { %v1271_v28 = vpop.permute.xlu0 %1270  ;;  %v1289_v49 = vadd.f32 %v1273_v58, %v1237_v38 }
 0x1e7   : > { %v1288_v20 = vadd.f32 %v1271_v28, %v1236_v6 }
 0x1e8   : > { %1299 = vst.msk [vmem:[%s2747_s10 + $0x38] sm:$0xf] %vm1292_vm4, %v1289_v49 }
 0x1e9   : > { %1298 = vst.msk [vmem:[%s2747_s10 + $0x30] sm:$0xff] %vm1290_vm5, %v1288_v20 }
 0x1ea PF: > { %p11_p8 = scmp.ge.s32.totalorder %s1535_s11, 4   ;;  %s3106_s6 = smov %s1488_s7 }
 0x1eb   : > { %s3107_s7 = smov %s1492_s8  ;;  %s3108_s8 = smov %s1545_s14 }
 0x1ec   : > { %s3109_s9 = smov %s1535_s11  ;;  %13 = sbr.rel (!%p11_p8) target bundleno = 3 (0x3), region = 64 }
 0x1f3   :  { %1324 = vsyncpa [#allocation3], 1 }
 0x1f4   :  { %1326 = vsyncpa [#allocation3 + $0x1], 1 }

</bundles_post_ra>
